<compile_context>
chip_gen: v6e
topology: v6e:2x2x1
jax: 0.10.0
libtpu: 0.0.40
codegen_flags: <defaults>
</compile_context>

<pallas_src>
import jax
import jax.numpy as jnp
from jax.experimental import pallas as pl
from jax.experimental.pallas import tpu as pltpu

HIDDEN = 128
OUT = 1

ROW_ALIGN = 256                        # fills v6e/v7x 256-row MXU M dim; /128 (v5e), /8 (f32 sublane)
X_TILE_TARGET_BYTES = 2 << 20          # ~2 MiB of x per grid step -> ~85% HBM roofline
VMEM_SOFT_BUDGET = 12 << 20            # computed-usage target; fits v5e 16 MiB scoped default
SINGLE_BUFFER_W1_MIN_BYTES = 1 << 20   # single-buffer W1 only when the 2nd copy costs real VMEM
VMEM_LIMIT_CAP = 48 << 20              # never request more than ~3/4 of v7x physical VMEM


def _round_up(n, m):
    return ((n + m - 1) // m) * m


def _round_down(n, m):
    return (n // m) * m


def mlp_kernel_mxu_out(x_ref, w1_ref, b1_ref, w2_ref, b2_ref, o_ref):
    # x_ref: (TB, IN)  w1_ref: (IN, 128)  b1_ref: (1, 128)
    # w2_ref: (128, 1) b2_ref: (1, 1) in SMEM            o_ref: (TB, 1)
    h = jnp.dot(x_ref[...], w1_ref[...], preferred_element_type=jnp.float32)
    h = jnp.maximum(h + b1_ref[...], 0.0)                       # (TB, 128), f32
    # N=1 MXU matmul: cheapest path when IN << 128 (MXU is nearly idle here and
    # the output is only TB*4 bytes per step).
    y = jnp.dot(h, w2_ref[...], preferred_element_type=jnp.float32)  # (TB, 1)
    o_ref[...] = (y + b2_ref[0, 0]).astype(o_ref.dtype)


def mlp_kernel_xlu_out(x_ref, w1_ref, b1_ref, w2_ref, b2_ref, o_ref):
    # Same inputs, but o_ref: (1, TB) lane-dense.  Used when IN >= 128 so the
    # XLU transpose of h is small relative to the x DMA.
    h = jnp.dot(x_ref[...], w1_ref[...], preferred_element_type=jnp.float32)
    h = jnp.maximum(h + b1_ref[...], 0.0)                       # (TB, 128)
    ht = jnp.transpose(h)                                       # (128, TB) via XLU
    y = jnp.sum(ht * w2_ref[...], axis=0, keepdims=True)        # (1, TB)
    o_ref[...] = (y + b2_ref[0, 0]).astype(o_ref.dtype)


def _choose_tile_b(B, in_features, x_itemsize, use_mxu_out, single_buffer_w1):
    """Pick the batch tile from in_features + a per-generation-safe VMEM budget."""
    if B < ROW_ALIGN:
        # Single full-extent block (block dim == array dim, always legal).
        return B, 1

    x_bytes_row = in_features * x_itemsize
    w1_bufs = 1 if single_buffer_w1 else 2
    fixed_bytes = w1_bufs * in_features * HIDDEN * 4 + 4 * HIDDEN * 4   # W1 + b1/W2/b2 slop
    # per-row cost: double-buffered x + h (+ transposed h copy on the XLU path) + output
    per_row_bytes = 2 * x_bytes_row + (1 if use_mxu_out else 2) * HIDDEN * 4 + 2 * 4

    tile_b = max(512, X_TILE_TARGET_BYTES // x_bytes_row)
    if VMEM_SOFT_BUDGET > fixed_bytes:
        tile_b = min(tile_b, (VMEM_SOFT_BUDGET - fixed_bytes) // per_row_bytes)
    tile_b = min(tile_b, _round_up(B, ROW_ALIGN))
    tile_b = max(ROW_ALIGN, _round_down(tile_b, ROW_ALIGN))
    # v7x megacore: keep >= 2 grid steps so both TensorCores get work.
    if pl.cdiv(B, tile_b) < 2:
        tile_b = max(ROW_ALIGN, _round_up(pl.cdiv(B, 2), ROW_ALIGN))
    return tile_b, pl.cdiv(B, tile_b)


def single_layer_nn(x, w1, b1, w2, b2):
    """x: (B, in) -> (B, 1).  w1: (in, 128), b1: (1, 128), w2: (128, 1), b2: (1, 1).

    x / w1 may be float32 or bfloat16 (accumulation is always f32); output is f32.
    """
    B, in_features = x.shape
    assert w1.shape == (in_features, HIDDEN)

    # Second-layer strategy (see header comment).
    use_mxu_out = in_features < 128

    w1_bytes = in_features * HIDDEN * 4
    single_buffer_w1 = w1_bytes >= SINGLE_BUFFER_W1_MIN_BYTES
    tile_b, num_tiles = _choose_tile_b(
        B, in_features, x.dtype.itemsize, use_mxu_out, single_buffer_w1)

    # Computed VMEM estimate; only raise the scoped limit when we actually need to
    # (very large in_features at the minimum tile).
    per_row_bytes = 2 * in_features * x.dtype.itemsize \
        + (1 if use_mxu_out else 2) * HIDDEN * 4 + 2 * 4
    vmem_estimate = (1 if single_buffer_w1 else 2) * w1_bytes + tile_b * per_row_bytes
    vmem_limit = None
    if vmem_estimate > VMEM_SOFT_BUDGET:
        vmem_limit = min(int(vmem_estimate * 1.5), VMEM_LIMIT_CAP)
        # TODO(synk): for in_features so large that even tile_b=256 exceeds this cap,
        # add a K grid axis ("arbitrary") streaming x/W1 in (tile_k,) chunks into an
        # f32 accumulator scratch instead of raising the limit further.

    w1_kwargs = {}
    if single_buffer_w1:
        # Constant index_map: default double-buffering would hold two copies of a
        # multi-MiB W1 that never changes; spend that VMEM on a bigger x tile instead.
        w1_kwargs["pipeline_mode"] = pl.Buffered(1)

    in_specs = [
        pl.BlockSpec((tile_b, in_features), lambda i: (i, 0)),           # stream x tiles
        pl.BlockSpec((in_features, HIDDEN), lambda i: (0, 0), **w1_kwargs),  # W1 resident
        pl.BlockSpec((1, HIDDEN), lambda i: (0, 0)),                     # b1 resident
        pl.BlockSpec((HIDDEN, OUT), lambda i: (0, 0)),                   # W2 resident
        pl.BlockSpec(memory_space=pltpu.SMEM),                           # b2 scalar
    ]
    compiler_params = pltpu.CompilerParams(
        dimension_semantics=("parallel",),   # shards batch tiles across v7x's 2 TCs
        vmem_limit_bytes=vmem_limit,
    )

    if use_mxu_out:
        out = pl.pallas_call(
            mlp_kernel_mxu_out,
            out_shape=jax.ShapeDtypeStruct((B, OUT), jnp.float32),
            grid=(num_tiles,),
            in_specs=in_specs,
            out_specs=pl.BlockSpec((tile_b, OUT), lambda i: (i, 0)),
            compiler_params=compiler_params,
        )(x, w1, b1, w2, b2)
        return out

    # Lane-dense (1, B) output row; ragged last block stores are masked by Pallas.
    out_row = pl.pallas_call(
        mlp_kernel_xlu_out,
        out_shape=jax.ShapeDtypeStruct((1, B), jnp.float32),
        grid=(num_tiles,),
        in_specs=in_specs,
        out_specs=pl.BlockSpec((1, tile_b), lambda i: (0, i)),
        compiler_params=compiler_params,
    )(x, w1, b1, w2, b2)
    return out_row[0][:, None]   # layout plumbing only: present the (B, 1) column


def init_params(key, input_size):
    """Deterministic init mimicking nn.Linear's uniform(-1/sqrt(fan_in), 1/sqrt(fan_in))."""
    k1, k2, k3, k4 = jax.random.split(key, 4)
    bound1 = 1.0 / jnp.sqrt(input_size)
    bound2 = 1.0 / jnp.sqrt(HIDDEN)
    w1 = jax.random.uniform(k1, (input_size, HIDDEN), jnp.float32, -bound1, bound1)
    b1 = jax.random.uniform(k2, (1, HIDDEN), jnp.float32, -bound1, bound1)
    w2 = jax.random.uniform(k3, (HIDDEN, OUT), jnp.float32, -bound2, bound2)
    b2 = jax.random.uniform(k4, (1, OUT), jnp.float32, -bound2, bound2)
    return w1, b1, w2, b2


if __name__ == "__main__":
    key = jax.random.PRNGKey(0)
    kx, kp = jax.random.split(key)

    # B deliberately NOT a multiple of the tile: exercises the un-padded ragged tail.
    batch, input_size = 1000, 32
    x = jax.random.normal(kx, (batch, input_size), jnp.float32)
    w1, b1, w2, b2 = init_params(kp, input_size)

    out = jax.block_until_ready(single_layer_nn(x, w1, b1, w2, b2))
    ref = jnp.maximum(x @ w1 + b1, 0.0) @ w2 + b2
    assert out.shape == (batch, 1)
    assert jnp.allclose(out, ref, atol=1e-4, rtol=1e-4), float(jnp.max(jnp.abs(out - ref)))

    # Tiny-batch path: single full-extent block (no padding, no ragged block).
    x2 = jax.random.normal(kx, (8, input_size), jnp.float32)
    out2 = jax.block_until_ready(single_layer_nn(x2, w1, b1, w2, b2))
    ref2 = jnp.maximum(x2 @ w1 + b1, 0.0) @ w2 + b2
    assert out2.shape == (8, 1)
    assert jnp.allclose(out2, ref2, atol=1e-4, rtol=1e-4), float(jnp.max(jnp.abs(out2 - ref2)))

    print("KERNEL_OK")
</pallas_src>

<mosaic_0001>
module attributes {stable_mosaic.version = 11 : i64} {
  func.func @mlp_kernel_mxu_out(%arg0: i32, %arg1: memref<512x32xf32, #tpu.memory_space<vmem>>, %arg2: memref<32x128xf32, #tpu.memory_space<vmem>>, %arg3: memref<1x128xf32, #tpu.memory_space<vmem>>, %arg4: memref<128x1xf32, #tpu.memory_space<vmem>>, %arg5: memref<1x1xf32, #tpu.memory_space<smem>>, %arg6: memref<512x1xf32, #tpu.memory_space<vmem>>) attributes {dimension_semantics = [#tpu.dimension_semantics<parallel>], iteration_bounds = array<i64: 2>, scalar_prefetch = 0 : i64, scratch_operands = 0 : i64, tpu.core_type = #tpu.core_type<tc>, window_params = [{transform_indices = @transform_0, window_bounds = array<i64: 512, 32>}, {pipeline_mode = #tpu.pipeline_mode<synchronous>, transform_indices = @transform_1, window_bounds = array<i64: 32, 128>}, {pipeline_mode = #tpu.pipeline_mode<synchronous>, transform_indices = @transform_2, window_bounds = array<i64: 1, 128>}, {pipeline_mode = #tpu.pipeline_mode<synchronous>, transform_indices = @transform_3, window_bounds = array<i64: 128, 1>}, {transform_indices = @transform_4, window_bounds = array<i64: 1, 1>}, {transform_indices = @transform_5, window_bounds = array<i64: 512, 1>}]} {
    %c0 = arith.constant 0 : index
    %c0_0 = arith.constant 0 : index
    %0 = vector.load %arg1[%c0, %c0_0] : memref<512x32xf32, #tpu.memory_space<vmem>>, vector<512x32xf32>
    %c0_1 = arith.constant 0 : index
    %c0_2 = arith.constant 0 : index
    %1 = vector.load %arg2[%c0_1, %c0_2] : memref<32x128xf32, #tpu.memory_space<vmem>>, vector<32x128xf32>
    %cst = arith.constant dense<0.000000e+00> : vector<512x128xf32>
    %2 = tpu.matmul %0, %1, %cst {dimension_numbers = #tpu.dot_dimension_numbers<[1], [0], [0], [1], [0, 0, 1, 1], [], []>} : vector<512x32xf32>, vector<32x128xf32>, vector<512x128xf32> -> vector<512x128xf32>
    %c0_3 = arith.constant 0 : index
    %c0_4 = arith.constant 0 : index
    %3 = vector.load %arg3[%c0_3, %c0_4] : memref<1x128xf32, #tpu.memory_space<vmem>>, vector<1x128xf32>
    %4 = vector.broadcast %3 : vector<1x128xf32> to vector<512x128xf32>
    %5 = arith.addf %2, %4 : vector<512x128xf32>
    %cst_5 = arith.constant 0.000000e+00 : f32
    %6 = vector.broadcast %cst_5 : f32 to vector<512x128xf32>
    %7 = arith.maximumf %5, %6 : vector<512x128xf32>
    %c0_6 = arith.constant 0 : index
    %c0_7 = arith.constant 0 : index
    %8 = vector.load %arg4[%c0_6, %c0_7] : memref<128x1xf32, #tpu.memory_space<vmem>>, vector<128x1xf32>
    %cst_8 = arith.constant dense<0.000000e+00> : vector<512x1xf32>
    %9 = tpu.matmul %7, %8, %cst_8 {dimension_numbers = #tpu.dot_dimension_numbers<[1], [0], [0], [1], [0, 0, 1, 1], [], []>} : vector<512x128xf32>, vector<128x1xf32>, vector<512x1xf32> -> vector<512x1xf32>
    %c0_9 = arith.constant 0 : index
    %c0_10 = arith.constant 0 : index
    %10 = memref.load %arg5[%c0_9, %c0_10] : memref<1x1xf32, #tpu.memory_space<smem>>
    %11 = vector.broadcast %10 : f32 to vector<512x1xf32>
    %12 = arith.addf %9, %11 : vector<512x1xf32>
    %c0_11 = arith.constant 0 : index
    %c0_12 = arith.constant 0 : index
    %13 = vector.load %arg6[%c0_11, %c0_12] : memref<512x1xf32, #tpu.memory_space<vmem>>, vector<512x1xf32>
    tpu.vector_store %arg6[%c0_11, %c0_12], %12 {strides = array<i32>} : memref<512x1xf32, #tpu.memory_space<vmem>>, vector<512x1xf32>,
    return
  }
  func.func @transform_0(%arg0: i32) -> (i32, i32) {
    %c0_i32 = arith.constant 0 : i32
    %c0_i32_0 = arith.constant 0 : i32
    return %arg0, %c0_i32 : i32, i32
  }
  func.func @transform_1(%arg0: i32) -> (i32, i32) {
    %c0_i32 = arith.constant 0 : i32
    %c0_i32_0 = arith.constant 0 : i32
    %c0_i32_1 = arith.constant 0 : i32
    return %c0_i32, %c0_i32_0 : i32, i32
  }
  func.func @transform_2(%arg0: i32) -> (i32, i32) {
    %c0_i32 = arith.constant 0 : i32
    %c0_i32_0 = arith.constant 0 : i32
    %c0_i32_1 = arith.constant 0 : i32
    return %c0_i32, %c0_i32_0 : i32, i32
  }
  func.func @transform_3(%arg0: i32) -> (i32, i32) {
    %c0_i32 = arith.constant 0 : i32
    %c0_i32_0 = arith.constant 0 : i32
    %c0_i32_1 = arith.constant 0 : i32
    return %c0_i32, %c0_i32_0 : i32, i32
  }
  func.func @transform_4(%arg0: i32) -> (i32, i32) {
    %c0_i32 = arith.constant 0 : i32
    %c0_i32_0 = arith.constant 0 : i32
    %c0_i32_1 = arith.constant 0 : i32
    return %c0_i32, %c0_i32_0 : i32, i32
  }
  func.func @transform_5(%arg0: i32) -> (i32, i32) {
    %c0_i32 = arith.constant 0 : i32
    %c0_i32_0 = arith.constant 0 : i32
    return %arg0, %c0_i32 : i32, i32
  }
}

</mosaic_0001>

<bundles_post_ra>
// kernel: tpu_custom_call.1
= control target key start
LH: loop header
LB: loop body
LE: loop exit
PB: predicated region body
PF: predicated region fallthrough
CT: control target
= control target key end

     0   :  { %s3312_s0 = inlined_call_operand.vmem [shape: f32[1000,32], index: 0, kind: input, shape index: {}]   ;;  %s3313_s1 = inlined_call_operand.vmem [shape: f32[32,128], index: 1, kind: input, shape index: {}]   ;;  %s3314_s2 = inlined_call_operand.vmem [shape: f32[1,128], index: 2, kind: input, shape index: {}]   ;;  %s3315_s3 = inlined_call_operand.vmem [shape: f32[128,1], index: 3, kind: input, shape index: {}]   ;;  %s3316_s4 = inlined_call_operand.<no memory space> [shape: f32[1,1], index: 4, kind: input, shape index: {}]   ;;  %s3317_s5 = inlined_call_operand.vmem [shape: f32[1000,1], index: 5, kind: output, shape index: {}]  }
   0x1   :  { %10 = sst [smem:[#allocation2]] %s3316_s4 }
   0x2   :  { %s2613_s20 = smov 0   ;;  %s2615_s21 = smov 0  }
   0x3   :  { %s2617_s22 = smov 0  }
   0x4 LB: > { %s2626_s4 = sadd.s32 4294967295, %s2546_s22   ;;  %s2628_s23 = sadd.s32 1, %s2546_s22   ;;  %s2546_s22 = sphi %s2617_s22, %s3326_s22   ;;  %s2542_s21 = sphi %s2615_s21, %s3325_s21   ;;  %s2538_s20 = sphi %s2613_s20, %s3324_s20  }
   0x5   : > { %s130_s24 = ssub.s32 %s2546_s22, %s2628_s23  ;;  %s133_s25 = sadd.s32 1, %s2542_s21 }
   0x6   : > { %p131_p0 = scmp.eq.s32.totalorder %s130_s24, 0  ;;  %p143_p1 = scmp.ne.s32.totalorder %s2542_s21, %s2538_s20 }
   0x7   : > { %p144_p2 = scmp.eq.s32.totalorder %s2626_s4, 1  ;;  %p1903_p3 = scmp.ge.s32.totalorder %s2546_s22, 1 }
   0x8   : > { %s2636_s26 = scalar_select %p131_p0, %s2542_s21, %s133_s25  }
   0x9   : > { %p2638_p4 = por %p144_p2, %p143_p1  ;;  %p197_p5 = scmp.lt.s32.totalorder %s2546_s22, 3 }
   0xb   : > { %p198_p6 = pnand %p1903_p3, %p197_p5 }
   0xc   : > { %s2649_s7 = sshll.u32 (!%p198_p6), %s2626_s4, 6  ;;  %s225_s14 = sand.u32 (!%p198_p6), 1, %s2538_s20  }
   0xd   : > { %201 = sbr.rel (%p198_p6) target bundleno = 613 (0x265), region = 40  ;;  %p233_p7 = scmp.lt.s32.totalorder (!%p198_p6), %s2649_s7, 124 }
   0xe   : > { %s1904_s15 = sshll.u32 (!%p198_p6), %s225_s14, 9 }
   0xf   : > { %s2913_s16 = scalar_lea.vmem (!%p198_p6), [#allocation3], %s1904_s15  }
  0x12   : > { %v314_v0 = vld [vmem:[%s3313_s1 + $0x18] sm:$0xff]  ;;  %v313_v1 = vld [vmem:[%s3313_s1 + $0x10] sm:$0xff]  ;;  %v312_v2 = vld [vmem:[%s3313_s1 + $0x8] sm:$0xff]  ;;  %s234_s10 = scalar_select %p233_p7, %s2649_s7, 124  ;;  %vm322_vm0 = vcmask 261120   ;;  %vm1367_vm1 = vcmask 7168  }
  0x13   : > { %2140 = vmatprep.subr.mxu0 %v314_v0  ;;  %v311_v3 = vld [vmem:[%s3313_s1] sm:$0xff]  ;;  %v979_v4 = vld [vmem:[%s3315_s3 + $0x78] sm:$0xff]  ;;  %v978_v8 = vld [vmem:[%s3315_s3 + $0x70] sm:$0xff]  ;;  %s1440_s20 = ssub.s32 (%p2638_p4), 125, %s2649_s7  ;;  %s1989_s17 = sshll.u32 (%p2638_p4), %s2626_s4, 9 }
  0x14   : > { %2141 = vmatpush3.msra.mxu0 %v314_v0  ;;  %s1906_s13 = sshll.u32 %s234_s10, 3  ;;  %2372 = vmatprep.subr.mxu1 %v979_v4  ;;  %v977_v10 = vld [vmem:[%s3315_s3 + $0x68] sm:$0xff]  ;;  %v976_v12 = vld [vmem:[%s3315_s3 + $0x60] sm:$0xff]  ;;  %v975_v14 = vld [vmem:[%s3315_s3 + $0x58] sm:$0xff]  ;;  %p1441_p8 = scmp.lt.s32.totalorder (%p2638_p4), %s1440_s20, 64 }
  0x15   : > { %2142 = vmatprep.subr.mxu0 %v313_v1  ;;  %s2665_s18 = scalar_lea.vmem %s3312_s0, %s1906_s13  ;;  %2388 = vmatpush3.msra.mxu1 %v979_v4  ;;  %v974_v16 = vld [vmem:[%s3315_s3 + $0x50] sm:$0xff]  ;;  %v973_v23 = vld [vmem:[%s3315_s3 + $0x48] sm:$0xff]  ;;  %v972_v24 = vld [vmem:[%s3315_s3 + $0x40] sm:$0xff]  ;;  %s3113_s24 = scalar_lea.vmem (%p2638_p4), %s3317_s5, %s1989_s17  }
  0x16   : > { %2143 = vmatpush3.msra.mxu0 %v313_v1  ;;  %v247_v5 = vld [vmem:[%s2665_s18] sm:$0xff]  ;;  %v248_v6 = vld [vmem:[%s2665_s18 + $0x8] sm:$0xff]  ;;  %v249_v7 = vld [vmem:[%s2665_s18 + $0x10] sm:$0xff]  ;;  %2373 = vmatprep.subr.mxu1 %v978_v8 }
  0x17   : > { %2144 = vmatprep.subr.mxu0 %v312_v2  ;;  %2148 = vmatprep.mubr.msk.f32.mxu0 %vm322_vm0, %v247_v5  ;;  %v250_v9 = vld [vmem:[%s2665_s18 + $0x18] sm:$0xff]  ;;  %v251_v11 = vld [vmem:[%s2665_s18 + $0x20] sm:$0xff]  ;;  %v252_v13 = vld [vmem:[%s2665_s18 + $0x28] sm:$0xff] }
  0x18   : > { %2145 = vmatpush3.msra.mxu0 %v312_v2  ;;  %2389 = vmatpush3.msra.mxu1 %v978_v8  ;;  %v253_v15 = vld [vmem:[%s2665_s18 + $0x30] sm:$0xff]  ;;  %v254_v17 = vld [vmem:[%s2665_s18 + $0x38] sm:$0xff]  ;;  %v255_v18 = vld [vmem:[%s2665_s18 + $0x40] sm:$0xff] }
  0x19   : > { %2146 = vmatprep.subr.mxu0 %v311_v3  ;;  %2374 = vmatprep.subr.mxu1 %v977_v10  ;;  %v256_v19 = vld [vmem:[%s2665_s18 + $0x48] sm:$0xff]  ;;  %v257_v20 = vld [vmem:[%s2665_s18 + $0x50] sm:$0xff]  ;;  %v258_v21 = vld [vmem:[%s2665_s18 + $0x58] sm:$0xff] }
  0x1a   : > { %2147 = vmatpush3.msra.mxu0 %v311_v3  ;;  %2390 = vmatpush3.msra.mxu1 %v977_v10  ;;  %v259_v22 = vld [vmem:[%s2665_s18 + $0x60] sm:$0xff]  ;;  %v260_v25 = vld [vmem:[%s2665_s18 + $0x68] sm:$0xff]  ;;  %v971_v26 = vld [vmem:[%s3315_s3 + $0x38] sm:$0xff] }
  0x1b   : > { %2149 = vmatmul.mubr.msk.f32.vlgmr.msra.gmra.mxu0 %vm322_vm0, %v248_v6  ;;  %2244 = vmatprep.subr.mxu0 %v979_v4  ;;  %v261_v27 = vld [vmem:[%s2665_s18 + $0x70] sm:$0xff]  ;;  %v262_v29 = vld [vmem:[%s2665_s18 + $0x78] sm:$0xff]  ;;  %v969_v30 = vld [vmem:[%s3315_s3 + $0x28] sm:$0xff] }
  0x1c   : > { %2151 = vmatprep.mubr.msk.f32.mxu0 %vm322_vm0, %v249_v7  ;;  %2245 = vmatpush3.msra.mxu0 %v979_v4  ;;  %v970_v28 = vld [vmem:[%s3315_s3 + $0x30] sm:$0xff]  ;;  %v263_v31 = vld [vmem:[%s2665_s18 + $0x80] sm:$0xff]  ;;  %v264_v33 = vld [vmem:[%s2665_s18 + $0x88] sm:$0xff] }
  0x1d   : > { %2246 = vmatprep.subr.mxu0 %v978_v8  ;;  %2375 = vmatprep.subr.mxu1 %v976_v12  ;;  %v968_v32 = vld [vmem:[%s3315_s3 + $0x20] sm:$0xff]  ;;  %v265_v34 = vld [vmem:[%s2665_s18 + $0x90] sm:$0xff]  ;;  %v266_v35 = vld [vmem:[%s2665_s18 + $0x98] sm:$0xff] }
  0x1e   : > { %2247 = vmatpush3.msra.mxu0 %v978_v8  ;;  %2391 = vmatpush3.msra.mxu1 %v976_v12  ;;  %v267_v36 = vld [vmem:[%s2665_s18 + $0xa0] sm:$0xff]  ;;  %v268_v37 = vld [vmem:[%s2665_s18 + $0xa8] sm:$0xff]  ;;  %v269_v38 = vld [vmem:[%s2665_s18 + $0xb0] sm:$0xff] }
  0x1f   : > { %2152 = vmatmul.mubr.msk.f32.gmra.mxu0 %vm322_vm0, %v250_v9  ;;  %2248 = vmatprep.subr.mxu0 %v977_v10  ;;  %v270_v39 = vld [vmem:[%s2665_s18 + $0xb8] sm:$0xff]  ;;  %v271_v40 = vld [vmem:[%s2665_s18 + $0xc0] sm:$0xff]  ;;  %v272_v41 = vld [vmem:[%s2665_s18 + $0xc8] sm:$0xff] }
  0x20   : > { %2154 = vmatprep.mubr.msk.f32.mxu0 %vm322_vm0, %v251_v11  ;;  %2249 = vmatpush3.msra.mxu0 %v977_v10  ;;  %v273_v42 = vld [vmem:[%s2665_s18 + $0xd0] sm:$0xff]  ;;  %v274_v43 = vld [vmem:[%s2665_s18 + $0xd8] sm:$0xff]  ;;  %v275_v44 = vld [vmem:[%s2665_s18 + $0xe0] sm:$0xff] }
  0x21   : > { %2250 = vmatprep.subr.mxu0 %v976_v12  ;;  %2376 = vmatprep.subr.mxu1 %v975_v14  ;;  %v276_v45 = vld [vmem:[%s2665_s18 + $0xe8] sm:$0xff]  ;;  %v277_v46 = vld [vmem:[%s2665_s18 + $0xf0] sm:$0xff]  ;;  %v278_v47 = vld [vmem:[%s2665_s18 + $0xf8] sm:$0xff] }
  0x22   : > { %2251 = vmatpush3.msra.mxu0 %v976_v12  ;;  %2392 = vmatpush3.msra.mxu1 %v975_v14  ;;  %v279_v48 = vld [vmem:[%s2665_s18 + $0x100] sm:$0xff]  ;;  %v280_v49 = vld [vmem:[%s2665_s18 + $0x108] sm:$0xff]  ;;  %v281_v50 = vld [vmem:[%s2665_s18 + $0x110] sm:$0xff] }
  0x23   : > { %2155 = vmatmul.mubr.msk.f32.gmra.mxu0 %vm322_vm0, %v252_v13  ;;  %2252 = vmatprep.subr.mxu0 %v975_v14  ;;  %v967_v51 = vld [vmem:[%s3315_s3 + $0x18] sm:$0xff]  ;;  %v966_v53 = vld [vmem:[%s3315_s3 + $0x10] sm:$0xff]  ;;  %v283_v54 = vld [vmem:[%s2665_s18 + $0x120] sm:$0xff] }
  0x24   : > { %2157 = vmatprep.mubr.msk.f32.mxu0 %vm322_vm0, %v253_v15  ;;  %2253 = vmatpush3.msra.mxu0 %v975_v14  ;;  %v282_v52 = vld [vmem:[%s2665_s18 + $0x118] sm:$0xff]  ;;  %v965_v55 = vld [vmem:[%s3315_s3 + $0x8] sm:$0xff]  ;;  %v964_v57 = vld [vmem:[%s3315_s3] sm:$0xff] }
  0x25   : > { %2254 = vmatprep.subr.mxu0 %v974_v16  ;;  %2377 = vmatprep.subr.mxu1 %v974_v16  ;;  %v284_v56 = vld [vmem:[%s2665_s18 + $0x128] sm:$0xff]  ;;  %v285_v58 = vld [vmem:[%s2665_s18 + $0x130] sm:$0xff]  ;;  %v286_v59 = vld [vmem:[%s2665_s18 + $0x138] sm:$0xff] }
  0x26   : > { %2255 = vmatpush3.msra.mxu0 %v974_v16  ;;  %2393 = vmatpush3.msra.mxu1 %v974_v16  ;;  %v287_v60 = vld [vmem:[%s2665_s18 + $0x140] sm:$0xff]  ;;  %v288_v61 = vld [vmem:[%s2665_s18 + $0x148] sm:$0xff]  ;;  %v289_v62 = vld [vmem:[%s2665_s18 + $0x150] sm:$0xff] }
  0x27   : > { %2158 = vmatmul.mubr.msk.f32.gmra.mxu0 %vm322_vm0, %v254_v17  ;;  %2256 = vmatprep.subr.mxu0 %v973_v23  ;;  %v290_v63 = vld [vmem:[%s2665_s18 + $0x158] sm:$0xff]  ;;  %v291_v0 = vld [vmem:[%s2665_s18 + $0x160] sm:$0xff]  ;;  %v292_v1 = vld [vmem:[%s2665_s18 + $0x168] sm:$0xff] }
  0x28   : > { %2160 = vmatprep.mubr.msk.f32.mxu0 %vm322_vm0, %v255_v18  ;;  %2257 = vmatpush3.msra.mxu0 %v973_v23  ;;  %v293_v2 = vld [vmem:[%s2665_s18 + $0x170] sm:$0xff]  ;;  %v294_v3 = vld [vmem:[%s2665_s18 + $0x178] sm:$0xff]  ;;  %v295_v4 = vld [vmem:[%s2665_s18 + $0x180] sm:$0xff] }
  0x29   : > { %2258 = vmatprep.subr.mxu0 %v972_v24  ;;  %2378 = vmatprep.subr.mxu1 %v973_v23  ;;  %v296_v5 = vld [vmem:[%s2665_s18 + $0x188] sm:$0xff]  ;;  %v297_v6 = vld [vmem:[%s2665_s18 + $0x190] sm:$0xff]  ;;  %v298_v7 = vld [vmem:[%s2665_s18 + $0x198] sm:$0xff] }
  0x2a   : > { %2259 = vmatpush3.msra.mxu0 %v972_v24  ;;  %2394 = vmatpush3.msra.mxu1 %v973_v23  ;;  %v299_v8 = vld [vmem:[%s2665_s18 + $0x1a0] sm:$0xff]  ;;  %v300_v9 = vld [vmem:[%s2665_s18 + $0x1a8] sm:$0xff]  ;;  %v301_v10 = vld [vmem:[%s2665_s18 + $0x1b0] sm:$0xff] }
  0x2b   : > { %2161 = vmatmul.mubr.msk.f32.gmra.mxu0 %vm322_vm0, %v256_v19  ;;  %2260 = vmatprep.subr.mxu0 %v971_v26  ;;  %v302_v11 = vld [vmem:[%s2665_s18 + $0x1b8] sm:$0xff]  ;;  %v303_v12 = vld [vmem:[%s2665_s18 + $0x1c0] sm:$0xff]  ;;  %v304_v13 = vld [vmem:[%s2665_s18 + $0x1c8] sm:$0xff] }
  0x2c   : > { %2163 = vmatprep.mubr.msk.f32.mxu0 %vm322_vm0, %v257_v20  ;;  %2261 = vmatpush3.msra.mxu0 %v971_v26  ;;  %v305_v14 = vld [vmem:[%s2665_s18 + $0x1d0] sm:$0xff]  ;;  %v306_v15 = vld [vmem:[%s2665_s18 + $0x1d8] sm:$0xff]  ;;  %v307_v16 = vld [vmem:[%s2665_s18 + $0x1e0] sm:$0xff] }
  0x2d   : > { %2262 = vmatprep.subr.mxu0 %v970_v28  ;;  %2379 = vmatprep.subr.mxu1 %v972_v24  ;;  %v308_v17 = vld [vmem:[%s2665_s18 + $0x1e8] sm:$0xff]  ;;  %v309_v18 = vld [vmem:[%s2665_s18 + $0x1f0] sm:$0xff]  ;;  %v310_v19 = vld [vmem:[%s2665_s18 + $0x1f8] sm:$0xff]  ;;  %s980_s18 = sld [smem:[#allocation2]] }
  0x2e   : > { %2263 = vmatpush3.msra.mxu0 %v970_v28  ;;  %2395 = vmatpush3.msra.mxu1 %v972_v24  ;;  %v2843_v20 = vld [vmem:[%s3314_s2] ss:$0 sm:$0xff] }
  0x2f   : > { %2164 = vmatmul.mubr.msk.f32.gmra.mxu0 %vm322_vm0, %v258_v21  ;;  %2264 = vmatprep.subr.mxu0 %v969_v30 }
  0x30   : > { %2166 = vmatprep.mubr.msk.f32.mxu0 %vm322_vm0, %v259_v22  ;;  %2265 = vmatpush3.msra.mxu0 %v969_v30 }
  0x31   : > { %2266 = vmatprep.subr.mxu0 %v968_v32  ;;  %2380 = vmatprep.subr.mxu1 %v971_v26 }
  0x32   : > { %2267 = vmatpush3.msra.mxu0 %v968_v32  ;;  %2396 = vmatpush3.msra.mxu1 %v971_v26 }
  0x33   : > { %2167 = vmatmul.mubr.msk.f32.gmra.mxu0 %vm322_vm0, %v260_v25  ;;  %2381 = vmatprep.subr.mxu1 %v970_v28 }
  0x34   : > { %2169 = vmatprep.mubr.msk.f32.mxu0 %vm322_vm0, %v261_v27  ;;  %2397 = vmatpush3.msra.mxu1 %v970_v28 }
  0x35   : > { %2382 = vmatprep.subr.mxu1 %v969_v30  ;;  %2268 = vmatprep.subr.mxu0 %v967_v51 }
  0x36   : > { %2398 = vmatpush3.msra.mxu1 %v969_v30  ;;  %2269 = vmatpush3.msra.mxu0 %v967_v51 }
  0x37   : > { %2170 = vmatmul.mubr.msk.f32.gmra.mxu0 %vm322_vm0, %v262_v29  ;;  %2383 = vmatprep.subr.mxu1 %v968_v32 }
  0x38   : > { %2172 = vmatprep.mubr.msk.f32.mxu0 %vm322_vm0, %v263_v31  ;;  %2399 = vmatpush3.msra.mxu1 %v968_v32 }
  0x39   : > { %2270 = vmatprep.subr.mxu0 %v966_v53  ;;  %2384 = vmatprep.subr.mxu1 %v967_v51 }
  0x3a   : > { %2271 = vmatpush3.msra.mxu0 %v966_v53  ;;  %2400 = vmatpush3.msra.mxu1 %v967_v51 }
  0x3b   : > { %2173 = vmatmul.mubr.msk.f32.gmra.mxu0 %vm322_vm0, %v264_v33  ;;  %2272 = vmatprep.subr.mxu0 %v965_v55 }
  0x3c   : > { %2175 = vmatprep.mubr.msk.f32.mxu0 %vm322_vm0, %v265_v34  ;;  %2273 = vmatpush3.msra.mxu0 %v965_v55 }
  0x3d   : > { %2274 = vmatprep.subr.mxu0 %v964_v57  ;;  %2385 = vmatprep.subr.mxu1 %v966_v53 }
  0x3e   : > { %2275 = vmatpush3.msra.mxu0 %v964_v57  ;;  %2401 = vmatpush3.msra.mxu1 %v966_v53 }
  0x3f   : > { %2176 = vmatmul.mubr.msk.f32.gmra.mxu0 %vm322_vm0, %v266_v35  ;;  %2386 = vmatprep.subr.mxu1 %v965_v55 }
  0x40   : > { %2178 = vmatprep.mubr.msk.f32.mxu0 %vm322_vm0, %v267_v36  ;;  %2402 = vmatpush3.msra.mxu1 %v965_v55 }
  0x41   : > { %2387 = vmatprep.subr.mxu1 %v964_v57 }
  0x42   : > { %2403 = vmatpush3.msra.mxu1 %v964_v57 }
  0x43   : > { %2179 = vmatmul.mubr.msk.f32.gmra.mxu0 %vm322_vm0, %v268_v37 }
  0x44   : > { %2181 = vmatprep.mubr.msk.f32.mxu0 %vm322_vm0, %v269_v38 }
  0x47   : > { %2182 = vmatmul.mubr.msk.f32.gmra.mxu0 %vm322_vm0, %v270_v39 }
  0x48   : > { %2184 = vmatprep.mubr.msk.f32.mxu0 %vm322_vm0, %v271_v40 }
  0x4b   : > { %2185 = vmatmul.mubr.msk.f32.gmra.mxu0 %vm322_vm0, %v272_v41 }
  0x4c   : > { %2187 = vmatprep.mubr.msk.f32.mxu0 %vm322_vm0, %v273_v42 }
  0x4f   : > { %2188 = vmatmul.mubr.msk.f32.gmra.mxu0 %vm322_vm0, %v274_v43 }
  0x50   : > { %2190 = vmatprep.mubr.msk.f32.mxu0 %vm322_vm0, %v275_v44 }
  0x53   : > { %2191 = vmatmul.mubr.msk.f32.gmra.mxu0 %vm322_vm0, %v276_v45 }
  0x54   : > { %2193 = vmatprep.mubr.msk.f32.mxu0 %vm322_vm0, %v277_v46 }
  0x57   : > { %2194 = vmatmul.mubr.msk.f32.gmra.mxu0 %vm322_vm0, %v278_v47 }
  0x58   : > { %2196 = vmatprep.mubr.msk.f32.mxu0 %vm322_vm0, %v279_v48 }
  0x5b   : > { %2197 = vmatmul.mubr.msk.f32.gmra.mxu0 %vm322_vm0, %v280_v49 }
  0x5c   : > { %2199 = vmatprep.mubr.msk.f32.mxu0 %vm322_vm0, %v281_v50 }
  0x5f   : > { %2200 = vmatmul.mubr.msk.f32.gmra.mxu0 %vm322_vm0, %v282_v52 }
  0x60   : > { %2202 = vmatprep.mubr.msk.f32.mxu0 %vm322_vm0, %v283_v54 }
  0x63   : > { %2203 = vmatmul.mubr.msk.f32.gmra.mxu0 %vm322_vm0, %v284_v56 }
  0x64   : > { %2205 = vmatprep.mubr.msk.f32.mxu0 %vm322_vm0, %v285_v58 }
  0x67   : > { %2206 = vmatmul.mubr.msk.f32.gmra.mxu0 %vm322_vm0, %v286_v59 }
  0x68   : > { %2208 = vmatprep.mubr.msk.f32.mxu0 %vm322_vm0, %v287_v60 }
  0x6b   : > { %2209 = vmatmul.mubr.msk.f32.gmra.mxu0 %vm322_vm0, %v288_v61 }
  0x6c   : > { %2211 = vmatprep.mubr.msk.f32.mxu0 %vm322_vm0, %v289_v62 }
  0x6f   : > { %2212 = vmatmul.mubr.msk.f32.gmra.mxu0 %vm322_vm0, %v290_v63 }
  0x70   : > { %2214 = vmatprep.mubr.msk.f32.mxu0 %vm322_vm0, %v291_v0 }
  0x73   : > { %2215 = vmatmul.mubr.msk.f32.gmra.mxu0 %vm322_vm0, %v292_v1 }
  0x74   : > { %2217 = vmatprep.mubr.msk.f32.mxu0 %vm322_vm0, %v293_v2 }
  0x77   : > { %2218 = vmatmul.mubr.msk.f32.gmra.mxu0 %vm322_vm0, %v294_v3 }
  0x78   : > { %2220 = vmatprep.mubr.msk.f32.mxu0 %vm322_vm0, %v295_v4 }
  0x7b   : > { %2221 = vmatmul.mubr.msk.f32.gmra.mxu0 %vm322_vm0, %v296_v5 }
  0x7c   : > { %2223 = vmatprep.mubr.msk.f32.mxu0 %vm322_vm0, %v297_v6 }
  0x7f   : > { %2224 = vmatmul.mubr.msk.f32.gmra.mxu0 %vm322_vm0, %v298_v7 }
  0x80   : > { %2226 = vmatprep.mubr.msk.f32.mxu0 %vm322_vm0, %v299_v8 }
  0x83   : > { %2227 = vmatmul.mubr.msk.f32.gmra.mxu0 %vm322_vm0, %v300_v9 }
  0x84   : > { %2229 = vmatprep.mubr.msk.f32.mxu0 %vm322_vm0, %v301_v10 }
  0x87   : > { %2230 = vmatmul.mubr.msk.f32.gmra.mxu0 %vm322_vm0, %v302_v11 }
  0x88   : > { %2232 = vmatprep.mubr.msk.f32.mxu0 %vm322_vm0, %v303_v12 }
  0x8b   : > { %2233 = vmatmul.mubr.msk.f32.gmra.mxu0 %vm322_vm0, %v304_v13 }
  0x8c   : > { %2235 = vmatprep.mubr.msk.f32.mxu0 %vm322_vm0, %v305_v14 }
  0x8f   : > { %2236 = vmatmul.mubr.msk.f32.gmra.mxu0 %vm322_vm0, %v306_v15 }
  0x90   : > { %2238 = vmatprep.mubr.msk.f32.mxu0 %vm322_vm0, %v307_v16 }
  0x93   : > { %2239 = vmatmul.mubr.msk.f32.gmra.mxu0 %vm322_vm0, %v308_v17 }
  0x94   : > { %2241 = vmatprep.mubr.msk.f32.mxu0 %vm322_vm0, %v309_v18 }
  0x97   : > { %2242 = vmatmul.mubr.msk.f32.gmra.mxu0 %vm322_vm0, %v310_v19 }
  0xdb   : > { %v2150_v21 = vpop.f32.mrf.mxu0 }
  0xdc   : > { %v587_v22 = vadd.f32 %v2150_v21, %v2843_v20 }
  0xdd   : > { %v581_v23 = vpop.f32.mrf.mxu0 }
  0xde   : > { %v582_v24 = vadd.f32 %v2843_v20, %v581_v23  ;;  %v901_v27 = vmax.f32 %v587_v22, 0.0 }
  0xdf   : > { %v2153_v25 = vpop.f32.mrf.mxu0 }
  0xe0   : > { %v900_v26 = vmax.f32 %v582_v24, 0.0  ;;  %v597_v28 = vadd.f32 %v2153_v25, %v2843_v20 }
  0xe1   : > { %v591_v29 = vpop.f32.mrf.mxu0 }
  0xe2   : > { %v592_v30 = vadd.f32 %v2843_v20, %v591_v29  ;;  %2276 = vmatprep.mubr.f32.mxu0 %v900_v26  ;;  %v903_v33 = vmax.f32 %v597_v28, 0.0 }
  0xe3   : > { %v2156_v31 = vpop.f32.mrf.mxu0  ;;  %2277 = vmatmul.mubr.f32.vlgmr.msra.gmra.mxu0 %v901_v27 }
  0xe4   : > { %v902_v32 = vmax.f32 %v592_v30, 0.0  ;;  %v607_v34 = vadd.f32 %v2156_v31, %v2843_v20 }
  0xe5   : > { %v601_v35 = vpop.f32.mrf.mxu0 }
  0xe6   : > { %v602_v36 = vadd.f32 %v2843_v20, %v601_v35  ;;  %2279 = vmatprep.mubr.f32.mxu0 %v902_v32  ;;  %v905_v39 = vmax.f32 %v607_v34, 0.0 }
  0xe7   : > { %v2159_v37 = vpop.f32.mrf.mxu0  ;;  %2280 = vmatmul.mubr.f32.gmra.mxu0 %v903_v33 }
  0xe8   : > { %v904_v38 = vmax.f32 %v602_v36, 0.0  ;;  %v617_v40 = vadd.f32 %v2159_v37, %v2843_v20 }
  0xe9   : > { %v611_v41 = vpop.f32.mrf.mxu0 }
  0xea   : > { %2282 = vmatprep.mubr.f32.mxu0 %v904_v38  ;;  %v612_v42 = vadd.f32 %v2843_v20, %v611_v41  ;;  %v907_v45 = vmax.f32 %v617_v40, 0.0 }
  0xeb   : > { %v2162_v43 = vpop.f32.mrf.mxu0  ;;  %2283 = vmatmul.mubr.f32.gmra.mxu0 %v905_v39 }
  0xec   : > { %v906_v44 = vmax.f32 %v612_v42, 0.0  ;;  %v627_v46 = vadd.f32 %v2162_v43, %v2843_v20 }
  0xed   : > { %v621_v47 = vpop.f32.mrf.mxu0 }
  0xee   : > { %v622_v48 = vadd.f32 %v2843_v20, %v621_v47  ;;  %2285 = vmatprep.mubr.f32.mxu1 %v906_v44  ;;  %v909_v51 = vmax.f32 %v627_v46, 0.0 }
  0xef   : > { %v2165_v49 = vpop.f32.mrf.mxu0  ;;  %2286 = vmatmul.mubr.f32.vlgmr.msra.gmra.mxu1 %v907_v45 }
  0xf0   : > { %v908_v50 = vmax.f32 %v622_v48, 0.0  ;;  %v637_v52 = vadd.f32 %v2165_v49, %v2843_v20 }
  0xf1   : > { %v631_v53 = vpop.f32.mrf.mxu0 }
  0xf2   : > { %v632_v54 = vadd.f32 %v2843_v20, %v631_v53  ;;  %2288 = vmatprep.mubr.f32.mxu1 %v908_v50  ;;  %v911_v57 = vmax.f32 %v637_v52, 0.0 }
  0xf3   : > { %v2168_v55 = vpop.f32.mrf.mxu0  ;;  %2289 = vmatmul.mubr.f32.gmra.mxu1 %v909_v51 }
  0xf4   : > { %v910_v56 = vmax.f32 %v632_v54, 0.0  ;;  %v647_v58 = vadd.f32 %v2168_v55, %v2843_v20 }
  0xf5   : > { %v641_v59 = vpop.f32.mrf.mxu0 }
  0xf6   : > { %v642_v60 = vadd.f32 %v2843_v20, %v641_v59  ;;  %2291 = vmatprep.mubr.f32.mxu1 %v910_v56  ;;  %v913_v63 = vmax.f32 %v647_v58, 0.0 }
  0xf7   : > { %v2171_v61 = vpop.f32.mrf.mxu0  ;;  %2292 = vmatmul.mubr.f32.gmra.mxu1 %v911_v57 }
  0xf8   : > { %v912_v62 = vmax.f32 %v642_v60, 0.0  ;;  %v657_v0 = vadd.f32 %v2171_v61, %v2843_v20 }
  0xf9   : > { %v651_v1 = vpop.f32.mrf.mxu0 }
  0xfa   : > { %v652_v2 = vadd.f32 %v2843_v20, %v651_v1  ;;  %2294 = vmatprep.mubr.f32.mxu1 %v912_v62  ;;  %v915_v5 = vmax.f32 %v657_v0, 0.0 }
  0xfb   : > { %v2174_v3 = vpop.f32.mrf.mxu0  ;;  %2295 = vmatmul.mubr.f32.gmra.mxu1 %v913_v63 }
  0xfc   : > { %v914_v4 = vmax.f32 %v652_v2, 0.0  ;;  %v667_v6 = vadd.f32 %v2174_v3, %v2843_v20 }
  0xfd   : > { %v661_v7 = vpop.f32.mrf.mxu0 }
  0xfe   : > { %v662_v8 = vadd.f32 %v2843_v20, %v661_v7  ;;  %2297 = vmatprep.mubr.f32.mxu1 %v914_v4  ;;  %v917_v11 = vmax.f32 %v667_v6, 0.0 }
  0xff   : > { %v2177_v9 = vpop.f32.mrf.mxu0  ;;  %2298 = vmatmul.mubr.f32.gmra.mxu1 %v915_v5 }
 0x100   : > { %v916_v10 = vmax.f32 %v662_v8, 0.0  ;;  %v677_v12 = vadd.f32 %v2177_v9, %v2843_v20 }
 0x101   : > { %v671_v13 = vpop.f32.mrf.mxu0 }
 0x102   : > { %v672_v14 = vadd.f32 %v2843_v20, %v671_v13  ;;  %2300 = vmatprep.mubr.f32.mxu1 %v916_v10  ;;  %v919_v17 = vmax.f32 %v677_v12, 0.0 }
 0x103   : > { %v2180_v15 = vpop.f32.mrf.mxu0  ;;  %2301 = vmatmul.mubr.f32.gmra.mxu1 %v917_v11 }
 0x104   : > { %v918_v16 = vmax.f32 %v672_v14, 0.0  ;;  %v687_v18 = vadd.f32 %v2180_v15, %v2843_v20 }
 0x105   : > { %v681_v19 = vpop.f32.mrf.mxu0 }
 0x106   : > { %v682_v21 = vadd.f32 %v2843_v20, %v681_v19  ;;  %2303 = vmatprep.mubr.f32.mxu1 %v918_v16  ;;  %v921_v24 = vmax.f32 %v687_v18, 0.0 }
 0x107   : > { %v2183_v22 = vpop.f32.mrf.mxu0  ;;  %2304 = vmatmul.mubr.f32.gmra.mxu1 %v919_v17 }
 0x108   : > { %v920_v23 = vmax.f32 %v682_v21, 0.0  ;;  %v697_v25 = vadd.f32 %v2183_v22, %v2843_v20 }
 0x109   : > { %v691_v26 = vpop.f32.mrf.mxu0 }
 0x10a   : > { %v692_v27 = vadd.f32 %v2843_v20, %v691_v26  ;;  %2306 = vmatprep.mubr.f32.mxu1 %v920_v23  ;;  %v923_v30 = vmax.f32 %v697_v25, 0.0 }
 0x10b   : > { %v2186_v28 = vpop.f32.mrf.mxu0  ;;  %2307 = vmatmul.mubr.f32.gmra.mxu1 %v921_v24 }
 0x10c   : > { %v922_v29 = vmax.f32 %v692_v27, 0.0  ;;  %v707_v31 = vadd.f32 %v2186_v28, %v2843_v20 }
 0x10d   : > { %v701_v32 = vpop.f32.mrf.mxu0 }
 0x10e   : > { %v702_v33 = vadd.f32 %v2843_v20, %v701_v32  ;;  %2309 = vmatprep.mubr.f32.mxu1 %v922_v29  ;;  %v925_v36 = vmax.f32 %v707_v31, 0.0 }
 0x10f   : > { %v2189_v34 = vpop.f32.mrf.mxu0  ;;  %2310 = vmatmul.mubr.f32.gmra.mxu1 %v923_v30 }
 0x110   : > { %v924_v35 = vmax.f32 %v702_v33, 0.0  ;;  %v717_v37 = vadd.f32 %v2189_v34, %v2843_v20 }
 0x111   : > { %v711_v38 = vpop.f32.mrf.mxu0 }
 0x112   : > { %v712_v39 = vadd.f32 %v2843_v20, %v711_v38  ;;  %2312 = vmatprep.mubr.f32.mxu1 %v924_v35  ;;  %v927_v42 = vmax.f32 %v717_v37, 0.0 }
 0x113   : > { %v2192_v40 = vpop.f32.mrf.mxu0  ;;  %2313 = vmatmul.mubr.f32.gmra.mxu1 %v925_v36 }
 0x114   : > { %v926_v41 = vmax.f32 %v712_v39, 0.0  ;;  %v727_v43 = vadd.f32 %v2192_v40, %v2843_v20 }
 0x115   : > { %v721_v44 = vpop.f32.mrf.mxu0 }
 0x116   : > { %v722_v45 = vadd.f32 %v2843_v20, %v721_v44  ;;  %2315 = vmatprep.mubr.f32.mxu1 %v926_v41  ;;  %v929_v48 = vmax.f32 %v727_v43, 0.0 }
 0x117   : > { %v2195_v46 = vpop.f32.mrf.mxu0  ;;  %2316 = vmatmul.mubr.f32.gmra.mxu1 %v927_v42 }
 0x118   : > { %v928_v47 = vmax.f32 %v722_v45, 0.0  ;;  %v737_v49 = vadd.f32 %v2195_v46, %v2843_v20 }
 0x119   : > { %v731_v50 = vpop.f32.mrf.mxu0 }
 0x11a   : > { %v732_v51 = vadd.f32 %v2843_v20, %v731_v50  ;;  %2318 = vmatprep.mubr.f32.mxu1 %v928_v47  ;;  %v931_v54 = vmax.f32 %v737_v49, 0.0 }
 0x11b   : > { %v2198_v52 = vpop.f32.mrf.mxu0  ;;  %2319 = vmatmul.mubr.f32.gmra.mxu1 %v929_v48 }
 0x11c   : > { %v930_v53 = vmax.f32 %v732_v51, 0.0  ;;  %v747_v55 = vadd.f32 %v2198_v52, %v2843_v20 }
 0x11d   : > { %v741_v56 = vpop.f32.mrf.mxu0 }
 0x11e   : > { %v742_v57 = vadd.f32 %v2843_v20, %v741_v56  ;;  %2321 = vmatprep.mubr.f32.mxu1 %v930_v53  ;;  %v933_v60 = vmax.f32 %v747_v55, 0.0 }
 0x11f   : > { %v2201_v58 = vpop.f32.mrf.mxu0  ;;  %2322 = vmatmul.mubr.f32.gmra.mxu1 %v931_v54 }
 0x120   : > { %v932_v59 = vmax.f32 %v742_v57, 0.0  ;;  %v757_v61 = vadd.f32 %v2201_v58, %v2843_v20 }
 0x121   : > { %v751_v62 = vpop.f32.mrf.mxu0 }
 0x122   : > { %v752_v63 = vadd.f32 %v2843_v20, %v751_v62  ;;  %2324 = vmatprep.mubr.f32.mxu1 %v932_v59  ;;  %v935_v2 = vmax.f32 %v757_v61, 0.0 }
 0x123   : > { %v2204_v0 = vpop.f32.mrf.mxu0  ;;  %2325 = vmatmul.mubr.f32.gmra.mxu1 %v933_v60 }
 0x124   : > { %v934_v1 = vmax.f32 %v752_v63, 0.0  ;;  %v767_v3 = vadd.f32 %v2204_v0, %v2843_v20 }
 0x125   : > { %v761_v4 = vpop.f32.mrf.mxu0 }
 0x126   : > { %v762_v5 = vadd.f32 %v2843_v20, %v761_v4  ;;  %2327 = vmatprep.mubr.f32.mxu1 %v934_v1  ;;  %v937_v8 = vmax.f32 %v767_v3, 0.0 }
 0x127   : > { %v2207_v6 = vpop.f32.mrf.mxu0  ;;  %2328 = vmatmul.mubr.f32.gmra.mxu1 %v935_v2 }
 0x128   : > { %v936_v7 = vmax.f32 %v762_v5, 0.0  ;;  %v777_v9 = vadd.f32 %v2207_v6, %v2843_v20 }
 0x129   : > { %v771_v10 = vpop.f32.mrf.mxu0 }
 0x12a   : > { %v772_v11 = vadd.f32 %v2843_v20, %v771_v10  ;;  %2330 = vmatprep.mubr.f32.mxu1 %v936_v7  ;;  %v939_v14 = vmax.f32 %v777_v9, 0.0 }
 0x12b   : > { %v2210_v12 = vpop.f32.mrf.mxu0  ;;  %2331 = vmatmul.mubr.f32.gmra.mxu1 %v937_v8 }
 0x12c   : > { %v938_v13 = vmax.f32 %v772_v11, 0.0  ;;  %v787_v15 = vadd.f32 %v2210_v12, %v2843_v20 }
 0x12d   : > { %v781_v16 = vpop.f32.mrf.mxu0 }
 0x12e   : > { %v782_v17 = vadd.f32 %v2843_v20, %v781_v16  ;;  %2333 = vmatprep.mubr.f32.mxu1 %v938_v13  ;;  %v941_v21 = vmax.f32 %v787_v15, 0.0 }
 0x12f   : > { %v2213_v18 = vpop.f32.mrf.mxu0  ;;  %2334 = vmatmul.mubr.f32.gmra.mxu1 %v939_v14 }
 0x130   : > { %v940_v19 = vmax.f32 %v782_v17, 0.0  ;;  %v797_v22 = vadd.f32 %v2213_v18, %v2843_v20 }
 0x131   : > { %v791_v23 = vpop.f32.mrf.mxu0 }
 0x132   : > { %v792_v24 = vadd.f32 %v2843_v20, %v791_v23  ;;  %2336 = vmatprep.mubr.f32.mxu1 %v940_v19  ;;  %v943_v27 = vmax.f32 %v797_v22, 0.0 }
 0x133   : > { %v2216_v25 = vpop.f32.mrf.mxu0  ;;  %2337 = vmatmul.mubr.f32.gmra.mxu1 %v941_v21 }
 0x134   : > { %v942_v26 = vmax.f32 %v792_v24, 0.0  ;;  %v807_v28 = vadd.f32 %v2216_v25, %v2843_v20  ;;  %v2910_v24 = vstv %s980_s18 }
 0x135   : > { %v801_v29 = vpop.f32.mrf.mxu0 }
 0x136   : > { %v802_v30 = vadd.f32 %v2843_v20, %v801_v29  ;;  %2339 = vmatprep.mubr.f32.mxu1 %v942_v26  ;;  %v945_v33 = vmax.f32 %v807_v28, 0.0 }
 0x137   : > { %v2219_v31 = vpop.f32.mrf.mxu0  ;;  %2340 = vmatmul.mubr.f32.gmra.mxu1 %v943_v27 }
 0x138   : > { %v944_v32 = vmax.f32 %v802_v30, 0.0  ;;  %v817_v34 = vadd.f32 %v2219_v31, %v2843_v20 }
 0x139   : > { %v811_v35 = vpop.f32.mrf.mxu0 }
 0x13a   : > { %v812_v36 = vadd.f32 %v2843_v20, %v811_v35  ;;  %2342 = vmatprep.mubr.f32.mxu1 %v944_v32  ;;  %v947_v39 = vmax.f32 %v817_v34, 0.0 }
 0x13b   : > { %v2222_v37 = vpop.f32.mrf.mxu0  ;;  %2343 = vmatmul.mubr.f32.gmra.mxu1 %v945_v33 }
 0x13c   : > { %v946_v38 = vmax.f32 %v812_v36, 0.0  ;;  %v827_v40 = vadd.f32 %v2222_v37, %v2843_v20 }
 0x13d   : > { %v821_v41 = vpop.f32.mrf.mxu0 }
 0x13e   : > { %v822_v42 = vadd.f32 %v2843_v20, %v821_v41  ;;  %2345 = vmatprep.mubr.f32.mxu1 %v946_v38  ;;  %v949_v45 = vmax.f32 %v827_v40, 0.0 }
 0x13f   : > { %v2225_v43 = vpop.f32.mrf.mxu0  ;;  %2346 = vmatmul.mubr.f32.gmra.mxu1 %v947_v39 }
 0x140   : > { %v948_v44 = vmax.f32 %v822_v42, 0.0  ;;  %v837_v46 = vadd.f32 %v2225_v43, %v2843_v20 }
 0x141   : > { %v831_v47 = vpop.f32.mrf.mxu0 }
 0x142   : > { %v832_v48 = vadd.f32 %v2843_v20, %v831_v47  ;;  %2348 = vmatprep.mubr.f32.mxu1 %v948_v44  ;;  %v951_v51 = vmax.f32 %v837_v46, 0.0 }
 0x143   : > { %v2228_v49 = vpop.f32.mrf.mxu0  ;;  %2349 = vmatmul.mubr.f32.gmra.mxu1 %v949_v45 }
 0x144   : > { %v950_v50 = vmax.f32 %v832_v48, 0.0  ;;  %v847_v52 = vadd.f32 %v2228_v49, %v2843_v20 }
 0x145   : > { %v841_v53 = vpop.f32.mrf.mxu0 }
 0x146   : > { %v842_v54 = vadd.f32 %v2843_v20, %v841_v53  ;;  %2351 = vmatprep.mubr.f32.mxu1 %v950_v50  ;;  %v953_v57 = vmax.f32 %v847_v52, 0.0 }
 0x147   : > { %v2231_v55 = vpop.f32.mrf.mxu0  ;;  %2352 = vmatmul.mubr.f32.gmra.mxu1 %v951_v51 }
 0x148   : > { %v952_v56 = vmax.f32 %v842_v54, 0.0  ;;  %v857_v58 = vadd.f32 %v2231_v55, %v2843_v20 }
 0x149   : > { %v851_v59 = vpop.f32.mrf.mxu0 }
 0x14a   : > { %v852_v60 = vadd.f32 %v2843_v20, %v851_v59  ;;  %2354 = vmatprep.mubr.f32.mxu1 %v952_v56  ;;  %v955_v63 = vmax.f32 %v857_v58, 0.0 }
 0x14b   : > { %v2234_v61 = vpop.f32.mrf.mxu0  ;;  %2355 = vmatmul.mubr.f32.gmra.mxu1 %v953_v57 }
 0x14c   : > { %v954_v62 = vmax.f32 %v852_v60, 0.0  ;;  %v867_v0 = vadd.f32 %v2234_v61, %v2843_v20 }
 0x14d   : > { %v861_v1 = vpop.f32.mrf.mxu0 }
 0x14e   : > { %v862_v2 = vadd.f32 %v2843_v20, %v861_v1  ;;  %2357 = vmatprep.mubr.f32.mxu1 %v954_v62  ;;  %v957_v5 = vmax.f32 %v867_v0, 0.0 }
 0x14f   : > { %v2237_v3 = vpop.f32.mrf.mxu0  ;;  %2358 = vmatmul.mubr.f32.gmra.mxu1 %v955_v63 }
 0x150   : > { %v956_v4 = vmax.f32 %v862_v2, 0.0  ;;  %v877_v6 = vadd.f32 %v2237_v3, %v2843_v20 }
 0x151   : > { %v871_v7 = vpop.f32.mrf.mxu0 }
 0x152   : > { %v872_v8 = vadd.f32 %v2843_v20, %v871_v7  ;;  %2360 = vmatprep.mubr.f32.mxu1 %v956_v4  ;;  %v959_v11 = vmax.f32 %v877_v6, 0.0 }
 0x153   : > { %v2240_v9 = vpop.f32.mrf.mxu0  ;;  %2361 = vmatmul.mubr.f32.gmra.mxu1 %v957_v5 }
 0x154   : > { %v958_v10 = vmax.f32 %v872_v8, 0.0  ;;  %v887_v12 = vadd.f32 %v2240_v9, %v2843_v20 }
 0x155   : > { %v881_v13 = vpop.f32.mrf.mxu0 }
 0x156   : > { %v882_v14 = vadd.f32 %v2843_v20, %v881_v13  ;;  %2363 = vmatprep.mubr.f32.mxu1 %v958_v10  ;;  %v961_v17 = vmax.f32 %v887_v12, 0.0 }
 0x157   : > { %v2243_v15 = vpop.f32.mrf.mxu0  ;;  %2364 = vmatmul.mubr.f32.gmra.mxu1 %v959_v11 }
 0x158   : > { %v960_v16 = vmax.f32 %v882_v14, 0.0  ;;  %v897_v18 = vadd.f32 %v2243_v15, %v2843_v20 }
 0x159   : > { %v891_v19 = vpop.f32.mrf.mxu0 }
 0x15a   : > { %v892_v21 = vadd.f32 %v2843_v20, %v891_v19  ;;  %2366 = vmatprep.mubr.f32.mxu1 %v960_v16  ;;  %v963_v23 = vmax.f32 %v897_v18, 0.0 }
 0x15b   : > { %2367 = vmatmul.mubr.f32.gmra.mxu1 %v961_v17 }
 0x15c   : > { %v962_v22 = vmax.f32 %v892_v21, 0.0 }
 0x15e   : > { %2369 = vmatprep.mubr.f32.mxu1 %v962_v22 }
 0x15f   : > { %2370 = vmatmul.mubr.f32.gmra.mxu1 %v963_v23 }
 0x1a3   : > { %v2278_v25 = vpop.f32.mrf.mxu0 }
 0x1a4   : > { %v1054_v26 = vadd.f32 %v2278_v25, %v2910_v24 }
 0x1a5   : > { %v1048_v27 = vpop.f32.mrf.mxu0 }
 0x1a6   : > { %1369 = vst.msk [vmem:[%s2913_s16 + $0x8] sm:$0xff] %vm1367_vm1, %v1054_v26  ;;  %v1049_v20 = vadd.f32 %v1048_v27, %v2910_v24 }
 0x1a7   : > { %v2281_v28 = vpop.f32.mrf.mxu0 }
 0x1a8   : > { %1368 = vst.msk [vmem:[%s2913_s16] sm:$0xff] %vm1367_vm1, %v1049_v20  ;;  %v1064_v29 = vadd.f32 %v2281_v28, %v2910_v24 }
 0x1a9   : > { %v1058_v30 = vpop.f32.mrf.mxu0 }
 0x1aa   : > { %1371 = vst.msk [vmem:[%s2913_s16 + $0x18] sm:$0xff] %vm1367_vm1, %v1064_v29  ;;  %v1059_v31 = vadd.f32 %v1058_v30, %v2910_v24 }
 0x1ab   : > { %v2284_v32 = vpop.f32.mrf.mxu0 }
 0x1ac   : > { %1370 = vst.msk [vmem:[%s2913_s16 + $0x10] sm:$0xff] %vm1367_vm1, %v1059_v31  ;;  %v1074_v33 = vadd.f32 %v2284_v32, %v2910_v24 }
 0x1ad   : > { %v1068_v34 = vpop.f32.mrf.mxu0 }
 0x1ae   : > { %1373 = vst.msk [vmem:[%s2913_s16 + $0x28] sm:$0xff] %vm1367_vm1, %v1074_v33  ;;  %v1069_v35 = vadd.f32 %v1068_v34, %v2910_v24 }
 0x1af   : > { %v2287_v36 = vpop.f32.mrf.mxu1 }
 0x1b0   : > { %1372 = vst.msk [vmem:[%s2913_s16 + $0x20] sm:$0xff] %vm1367_vm1, %v1069_v35  ;;  %v1084_v37 = vadd.f32 %v2287_v36, %v2910_v24 }
 0x1b1   : > { %v1078_v38 = vpop.f32.mrf.mxu1 }
 0x1b2   : > { %1375 = vst.msk [vmem:[%s2913_s16 + $0x38] sm:$0xff] %vm1367_vm1, %v1084_v37  ;;  %v1079_v39 = vadd.f32 %v1078_v38, %v2910_v24 }
 0x1b3   : > { %v2290_v40 = vpop.f32.mrf.mxu1 }
 0x1b4   : > { %1374 = vst.msk [vmem:[%s2913_s16 + $0x30] sm:$0xff] %vm1367_vm1, %v1079_v39  ;;  %v1094_v41 = vadd.f32 %v2290_v40, %v2910_v24 }
 0x1b5   : > { %v1088_v42 = vpop.f32.mrf.mxu1 }
 0x1b6   : > { %1377 = vst.msk [vmem:[%s2913_s16 + $0x48] sm:$0xff] %vm1367_vm1, %v1094_v41  ;;  %v1089_v43 = vadd.f32 %v1088_v42, %v2910_v24 }
 0x1b7   : > { %v2293_v44 = vpop.f32.mrf.mxu1 }
 0x1b8   : > { %1376 = vst.msk [vmem:[%s2913_s16 + $0x40] sm:$0xff] %vm1367_vm1, %v1089_v43  ;;  %v1104_v45 = vadd.f32 %v2293_v44, %v2910_v24 }
 0x1b9   : > { %v1098_v46 = vpop.f32.mrf.mxu1 }
 0x1ba   : > { %1379 = vst.msk [vmem:[%s2913_s16 + $0x58] sm:$0xff] %vm1367_vm1, %v1104_v45  ;;  %v1099_v47 = vadd.f32 %v1098_v46, %v2910_v24 }
 0x1bb   : > { %v2296_v48 = vpop.f32.mrf.mxu1 }
 0x1bc   : > { %1378 = vst.msk [vmem:[%s2913_s16 + $0x50] sm:$0xff] %vm1367_vm1, %v1099_v47  ;;  %v1114_v49 = vadd.f32 %v2296_v48, %v2910_v24 }
 0x1bd   : > { %v1108_v50 = vpop.f32.mrf.mxu1 }
 0x1be   : > { %1381 = vst.msk [vmem:[%s2913_s16 + $0x68] sm:$0xff] %vm1367_vm1, %v1114_v49  ;;  %v1109_v51 = vadd.f32 %v1108_v50, %v2910_v24 }
 0x1bf   : > { %v2299_v52 = vpop.f32.mrf.mxu1 }
 0x1c0   : > { %1380 = vst.msk [vmem:[%s2913_s16 + $0x60] sm:$0xff] %vm1367_vm1, %v1109_v51  ;;  %v1124_v53 = vadd.f32 %v2299_v52, %v2910_v24 }
 0x1c1   : > { %v1118_v54 = vpop.f32.mrf.mxu1 }
 0x1c2   : > { %1383 = vst.msk [vmem:[%s2913_s16 + $0x78] sm:$0xff] %vm1367_vm1, %v1124_v53  ;;  %v1119_v55 = vadd.f32 %v1118_v54, %v2910_v24 }
 0x1c3   : > { %v2302_v56 = vpop.f32.mrf.mxu1 }
 0x1c4   : > { %1382 = vst.msk [vmem:[%s2913_s16 + $0x70] sm:$0xff] %vm1367_vm1, %v1119_v55  ;;  %v1134_v57 = vadd.f32 %v2302_v56, %v2910_v24 }
 0x1c5   : > { %v1128_v58 = vpop.f32.mrf.mxu1 }
 0x1c6   : > { %1385 = vst.msk [vmem:[%s2913_s16 + $0x88] sm:$0xff] %vm1367_vm1, %v1134_v57  ;;  %v1129_v59 = vadd.f32 %v1128_v58, %v2910_v24 }
 0x1c7   : > { %v2305_v60 = vpop.f32.mrf.mxu1 }
 0x1c8   : > { %1384 = vst.msk [vmem:[%s2913_s16 + $0x80] sm:$0xff] %vm1367_vm1, %v1129_v59  ;;  %v1144_v61 = vadd.f32 %v2305_v60, %v2910_v24 }
 0x1c9   : > { %v1138_v62 = vpop.f32.mrf.mxu1 }
 0x1ca   : > { %1387 = vst.msk [vmem:[%s2913_s16 + $0x98] sm:$0xff] %vm1367_vm1, %v1144_v61  ;;  %v1139_v63 = vadd.f32 %v1138_v62, %v2910_v24 }
 0x1cb   : > { %v2308_v0 = vpop.f32.mrf.mxu1 }
 0x1cc   : > { %1386 = vst.msk [vmem:[%s2913_s16 + $0x90] sm:$0xff] %vm1367_vm1, %v1139_v63  ;;  %v1154_v1 = vadd.f32 %v2308_v0, %v2910_v24 }
 0x1cd   : > { %v1148_v2 = vpop.f32.mrf.mxu1 }
 0x1ce   : > { %1389 = vst.msk [vmem:[%s2913_s16 + $0xa8] sm:$0xff] %vm1367_vm1, %v1154_v1  ;;  %v1149_v3 = vadd.f32 %v1148_v2, %v2910_v24 }
 0x1cf   : > { %v2311_v4 = vpop.f32.mrf.mxu1 }
 0x1d0   : > { %1388 = vst.msk [vmem:[%s2913_s16 + $0xa0] sm:$0xff] %vm1367_vm1, %v1149_v3  ;;  %v1164_v5 = vadd.f32 %v2311_v4, %v2910_v24 }
 0x1d1   : > { %v1158_v6 = vpop.f32.mrf.mxu1 }
 0x1d2   : > { %1391 = vst.msk [vmem:[%s2913_s16 + $0xb8] sm:$0xff] %vm1367_vm1, %v1164_v5  ;;  %v1159_v7 = vadd.f32 %v1158_v6, %v2910_v24 }
 0x1d3   : > { %v2314_v8 = vpop.f32.mrf.mxu1 }
 0x1d4   : > { %1390 = vst.msk [vmem:[%s2913_s16 + $0xb0] sm:$0xff] %vm1367_vm1, %v1159_v7  ;;  %v1174_v9 = vadd.f32 %v2314_v8, %v2910_v24 }
 0x1d5   : > { %v1168_v10 = vpop.f32.mrf.mxu1 }
 0x1d6   : > { %1393 = vst.msk [vmem:[%s2913_s16 + $0xc8] sm:$0xff] %vm1367_vm1, %v1174_v9  ;;  %v1169_v11 = vadd.f32 %v1168_v10, %v2910_v24 }
 0x1d7   : > { %v2317_v12 = vpop.f32.mrf.mxu1 }
 0x1d8   : > { %1392 = vst.msk [vmem:[%s2913_s16 + $0xc0] sm:$0xff] %vm1367_vm1, %v1169_v11  ;;  %v1184_v13 = vadd.f32 %v2317_v12, %v2910_v24 }
 0x1d9   : > { %v1178_v14 = vpop.f32.mrf.mxu1 }
 0x1da   : > { %1395 = vst.msk [vmem:[%s2913_s16 + $0xd8] sm:$0xff] %vm1367_vm1, %v1184_v13  ;;  %v1179_v15 = vadd.f32 %v1178_v14, %v2910_v24 }
 0x1db   : > { %v2320_v16 = vpop.f32.mrf.mxu1 }
 0x1dc   : > { %1394 = vst.msk [vmem:[%s2913_s16 + $0xd0] sm:$0xff] %vm1367_vm1, %v1179_v15  ;;  %v1194_v17 = vadd.f32 %v2320_v16, %v2910_v24 }
 0x1dd   : > { %v1188_v18 = vpop.f32.mrf.mxu1 }
 0x1de   : > { %1397 = vst.msk [vmem:[%s2913_s16 + $0xe8] sm:$0xff] %vm1367_vm1, %v1194_v17  ;;  %v1189_v19 = vadd.f32 %v1188_v18, %v2910_v24 }
 0x1df   : > { %v2323_v21 = vpop.f32.mrf.mxu1 }
 0x1e0   : > { %1396 = vst.msk [vmem:[%s2913_s16 + $0xe0] sm:$0xff] %vm1367_vm1, %v1189_v19  ;;  %v1204_v22 = vadd.f32 %v2323_v21, %v2910_v24 }
 0x1e1   : > { %v1198_v23 = vpop.f32.mrf.mxu1 }
 0x1e2   : > { %1399 = vst.msk [vmem:[%s2913_s16 + $0xf8] sm:$0xff] %vm1367_vm1, %v1204_v22  ;;  %v1199_v25 = vadd.f32 %v1198_v23, %v2910_v24 }
 0x1e3   : > { %v2326_v26 = vpop.f32.mrf.mxu1 }
 0x1e4   : > { %1398 = vst.msk [vmem:[%s2913_s16 + $0xf0] sm:$0xff] %vm1367_vm1, %v1199_v25  ;;  %v1214_v27 = vadd.f32 %v2326_v26, %v2910_v24 }
 0x1e5   : > { %v1208_v20 = vpop.f32.mrf.mxu1 }
 0x1e6   : > { %1401 = vst.msk [vmem:[%s2913_s16 + $0x108] sm:$0xff] %vm1367_vm1, %v1214_v27  ;;  %v1209_v28 = vadd.f32 %v1208_v20, %v2910_v24 }
 0x1e7   : > { %v2329_v29 = vpop.f32.mrf.mxu1 }
 0x1e8   : > { %1400 = vst.msk [vmem:[%s2913_s16 + $0x100] sm:$0xff] %vm1367_vm1, %v1209_v28  ;;  %v1224_v30 = vadd.f32 %v2329_v29, %v2910_v24 }
 0x1e9   : > { %v1218_v31 = vpop.f32.mrf.mxu1 }
 0x1ea   : > { %1403 = vst.msk [vmem:[%s2913_s16 + $0x118] sm:$0xff] %vm1367_vm1, %v1224_v30  ;;  %v1219_v32 = vadd.f32 %v1218_v31, %v2910_v24 }
 0x1eb   : > { %v2332_v33 = vpop.f32.mrf.mxu1 }
 0x1ec   : > { %1402 = vst.msk [vmem:[%s2913_s16 + $0x110] sm:$0xff] %vm1367_vm1, %v1219_v32  ;;  %v1234_v34 = vadd.f32 %v2332_v33, %v2910_v24 }
 0x1ed   : > { %v1228_v35 = vpop.f32.mrf.mxu1 }
 0x1ee   : > { %1405 = vst.msk [vmem:[%s2913_s16 + $0x128] sm:$0xff] %vm1367_vm1, %v1234_v34  ;;  %v1229_v36 = vadd.f32 %v1228_v35, %v2910_v24 }
 0x1ef   : > { %v2335_v37 = vpop.f32.mrf.mxu1 }
 0x1f0   : > { %1404 = vst.msk [vmem:[%s2913_s16 + $0x120] sm:$0xff] %vm1367_vm1, %v1229_v36  ;;  %v1244_v38 = vadd.f32 %v2335_v37, %v2910_v24 }
 0x1f1   : > { %v1238_v39 = vpop.f32.mrf.mxu1 }
 0x1f2   : > { %1407 = vst.msk [vmem:[%s2913_s16 + $0x138] sm:$0xff] %vm1367_vm1, %v1244_v38  ;;  %v1239_v40 = vadd.f32 %v1238_v39, %v2910_v24 }
 0x1f3   : > { %v2338_v41 = vpop.f32.mrf.mxu1 }
 0x1f4   : > { %1406 = vst.msk [vmem:[%s2913_s16 + $0x130] sm:$0xff] %vm1367_vm1, %v1239_v40  ;;  %v1254_v42 = vadd.f32 %v2338_v41, %v2910_v24 }
 0x1f5   : > { %v1248_v43 = vpop.f32.mrf.mxu1 }
 0x1f6   : > { %1409 = vst.msk [vmem:[%s2913_s16 + $0x148] sm:$0xff] %vm1367_vm1, %v1254_v42  ;;  %v1249_v44 = vadd.f32 %v1248_v43, %v2910_v24 }
 0x1f7   : > { %v2341_v45 = vpop.f32.mrf.mxu1 }
 0x1f8   : > { %1408 = vst.msk [vmem:[%s2913_s16 + $0x140] sm:$0xff] %vm1367_vm1, %v1249_v44  ;;  %v1264_v46 = vadd.f32 %v2341_v45, %v2910_v24 }
 0x1f9   : > { %v1258_v47 = vpop.f32.mrf.mxu1 }
 0x1fa   : > { %1411 = vst.msk [vmem:[%s2913_s16 + $0x158] sm:$0xff] %vm1367_vm1, %v1264_v46  ;;  %v1259_v48 = vadd.f32 %v1258_v47, %v2910_v24 }
 0x1fb   : > { %v2344_v49 = vpop.f32.mrf.mxu1 }
 0x1fc   : > { %1410 = vst.msk [vmem:[%s2913_s16 + $0x150] sm:$0xff] %vm1367_vm1, %v1259_v48  ;;  %v1274_v50 = vadd.f32 %v2344_v49, %v2910_v24 }
 0x1fd   : > { %v1268_v51 = vpop.f32.mrf.mxu1 }
 0x1fe   : > { %1413 = vst.msk [vmem:[%s2913_s16 + $0x168] sm:$0xff] %vm1367_vm1, %v1274_v50  ;;  %v1269_v52 = vadd.f32 %v1268_v51, %v2910_v24 }
 0x1ff   : > { %v2347_v53 = vpop.f32.mrf.mxu1 }
 0x200   : > { %1412 = vst.msk [vmem:[%s2913_s16 + $0x160] sm:$0xff] %vm1367_vm1, %v1269_v52  ;;  %v1284_v54 = vadd.f32 %v2347_v53, %v2910_v24 }
 0x201   : > { %v1278_v55 = vpop.f32.mrf.mxu1 }
 0x202   : > { %1415 = vst.msk [vmem:[%s2913_s16 + $0x178] sm:$0xff] %vm1367_vm1, %v1284_v54  ;;  %v1279_v56 = vadd.f32 %v1278_v55, %v2910_v24 }
 0x203   : > { %v2350_v57 = vpop.f32.mrf.mxu1 }
 0x204   : > { %1414 = vst.msk [vmem:[%s2913_s16 + $0x170] sm:$0xff] %vm1367_vm1, %v1279_v56  ;;  %v1294_v58 = vadd.f32 %v2350_v57, %v2910_v24 }
 0x205   : > { %v1288_v59 = vpop.f32.mrf.mxu1 }
 0x206   : > { %1417 = vst.msk [vmem:[%s2913_s16 + $0x188] sm:$0xff] %vm1367_vm1, %v1294_v58  ;;  %v1289_v60 = vadd.f32 %v1288_v59, %v2910_v24 }
 0x207   : > { %v2353_v61 = vpop.f32.mrf.mxu1 }
 0x208   : > { %1416 = vst.msk [vmem:[%s2913_s16 + $0x180] sm:$0xff] %vm1367_vm1, %v1289_v60  ;;  %v1304_v62 = vadd.f32 %v2353_v61, %v2910_v24 }
 0x209   : > { %v1298_v63 = vpop.f32.mrf.mxu1 }
 0x20a   : > { %1419 = vst.msk [vmem:[%s2913_s16 + $0x198] sm:$0xff] %vm1367_vm1, %v1304_v62  ;;  %v1299_v0 = vadd.f32 %v1298_v63, %v2910_v24 }
 0x20b   : > { %v2356_v1 = vpop.f32.mrf.mxu1 }
 0x20c   : > { %1418 = vst.msk [vmem:[%s2913_s16 + $0x190] sm:$0xff] %vm1367_vm1, %v1299_v0  ;;  %v1314_v2 = vadd.f32 %v2356_v1, %v2910_v24 }
 0x20d   : > { %v1308_v3 = vpop.f32.mrf.mxu1 }
 0x20e   : > { %1421 = vst.msk [vmem:[%s2913_s16 + $0x1a8] sm:$0xff] %vm1367_vm1, %v1314_v2  ;;  %v1309_v4 = vadd.f32 %v1308_v3, %v2910_v24 }
 0x20f   : > { %v2359_v5 = vpop.f32.mrf.mxu1 }
 0x210   : > { %1420 = vst.msk [vmem:[%s2913_s16 + $0x1a0] sm:$0xff] %vm1367_vm1, %v1309_v4  ;;  %v1324_v6 = vadd.f32 %v2359_v5, %v2910_v24 }
 0x211   : > { %v1318_v7 = vpop.f32.mrf.mxu1 }
 0x212   : > { %1423 = vst.msk [vmem:[%s2913_s16 + $0x1b8] sm:$0xff] %vm1367_vm1, %v1324_v6  ;;  %v1319_v8 = vadd.f32 %v1318_v7, %v2910_v24 }
 0x213   : > { %v2362_v9 = vpop.f32.mrf.mxu1 }
 0x214   : > { %1422 = vst.msk [vmem:[%s2913_s16 + $0x1b0] sm:$0xff] %vm1367_vm1, %v1319_v8  ;;  %v1334_v10 = vadd.f32 %v2362_v9, %v2910_v24 }
 0x215   : > { %v1328_v11 = vpop.f32.mrf.mxu1 }
 0x216   : > { %1425 = vst.msk [vmem:[%s2913_s16 + $0x1c8] sm:$0xff] %vm1367_vm1, %v1334_v10  ;;  %v1329_v12 = vadd.f32 %v1328_v11, %v2910_v24 }
 0x217   : > { %v2365_v13 = vpop.f32.mrf.mxu1 }
 0x218   : > { %1424 = vst.msk [vmem:[%s2913_s16 + $0x1c0] sm:$0xff] %vm1367_vm1, %v1329_v12  ;;  %v1344_v14 = vadd.f32 %v2365_v13, %v2910_v24 }
 0x219   : > { %v1338_v15 = vpop.f32.mrf.mxu1 }
 0x21a   : > { %1427 = vst.msk [vmem:[%s2913_s16 + $0x1d8] sm:$0xff] %vm1367_vm1, %v1344_v14  ;;  %v1339_v16 = vadd.f32 %v1338_v15, %v2910_v24 }
 0x21b   : > { %v2368_v17 = vpop.f32.mrf.mxu1 }
 0x21c   : > { %1426 = vst.msk [vmem:[%s2913_s16 + $0x1d0] sm:$0xff] %vm1367_vm1, %v1339_v16  ;;  %v1354_v18 = vadd.f32 %v2368_v17, %v2910_v24 }
 0x21d   : > { %v1348_v19 = vpop.f32.mrf.mxu1 }
 0x21e   : > { %1429 = vst.msk [vmem:[%s2913_s16 + $0x1e8] sm:$0xff] %vm1367_vm1, %v1354_v18  ;;  %v1349_v21 = vadd.f32 %v1348_v19, %v2910_v24 }
 0x21f   : > { %v2371_v22 = vpop.f32.mrf.mxu1 }
 0x220   : > { %1428 = vst.msk [vmem:[%s2913_s16 + $0x1e0] sm:$0xff] %vm1367_vm1, %v1349_v21  ;;  %v1364_v23 = vadd.f32 %v2371_v22, %v2910_v24  ;;  %1438 = sbr.rel (!%p2638_p4) target bundleno = 613 (0x265), region = 44 }
 0x221   : > { %v1358_v25 = vpop.f32.mrf.mxu1 }
 0x222   : > { %1431 = vst.msk [vmem:[%s2913_s16 + $0x1f8] sm:$0xff] %vm1367_vm1, %v1364_v23  ;;  %v1359_v26 = vadd.f32 %v1358_v25, %v2910_v24 }
 0x224   : > { %1430 = vst.msk [vmem:[%s2913_s16 + $0x1f0] sm:$0xff] %vm1367_vm1, %v1359_v26 }
 0x225   : > { %s3328_s20 = smov (!%p1441_p8, %s1440_s20), 64 }
 0x226   : > { %s1974_s25 = sshll.u32 %s3328_s20, 7 }
 0x227   : > { %p1977_p9 = scmp.eq.s32.totalorder %s1974_s25, 0 }
 0x228   : > { %s3119_s28 = sshrl.u32 (!%p1977_p9), %s3328_s20, 6 }
 0x229   : > { %1449 = sbr.rel (%p1977_p9) target bundleno = 613 (0x265), region = 48  ;;  %p1978_p10 = scmp.le.s32.totalorder (!%p1977_p9), %s3119_s28, 0 }
 0x22e   : > { %1856 = sbr.rel (%p1978_p10) target bundleno = 596 (0x254), region = 124  ;;  %s3319_s4 = smov (!%p1978_p10), %s3113_s24 }
 0x22f   : > { %s3320_s27 = smov (!%p1978_p10), %s2913_s16  ;;  %s3128_s7 = smov (!%p1978_p10), 0  }
 0x230   : > { %s3130_s29 = smov (!%p1978_p10), 0  }
 0x233 LB: >> { %v1638_v24 = vld [vmem:[%s2554_s27] sm:$0xff]  ;;  %v1640_v27 = vld [vmem:[%s2554_s27 + $0x8] sm:$0xff]  ;;  %v1642_v20 = vld [vmem:[%s2554_s27 + $0x10] sm:$0xff]  ;;  %s1766_s30 = sadd.s32 1, %s2558_s7  ;;  %s1632_s29 = sadd.s32 1, %s2562_s29   ;;  %s2562_s29 = sphi %s3130_s29, %s1632_s29   ;;  %s2558_s7 = sphi %s3128_s7, %s3323_s7   ;;  %s2554_s27 = sphi %s3320_s27, %s3322_s27   ;;  %s2550_s4 = sphi %s3319_s4, %s3321_s4  }
 0x234   : >> { %1639 = vst [vmem:[%s2550_s4] sm:$0xff] %v1638_v24  ;;  %1641 = vst [vmem:[%s2550_s4 + $0x8] sm:$0xff] %v1640_v27  ;;  %v1644_v28 = vld [vmem:[%s2554_s27 + $0x18] sm:$0xff]  ;;  %v1646_v29 = vld [vmem:[%s2554_s27 + $0x20] sm:$0xff]  ;;  %p1767_p11 = scmp.ge.s32.totalorder %s1766_s30, %s3119_s28  ;;  %p1631_p12 = scmp.ge.s32.totalorder %s1632_s29, %s3119_s28 }
 0x235   : >> { %1643 = vst [vmem:[%s2550_s4 + $0x10] sm:$0xff] %v1642_v20  ;;  %v1648_v30 = vld [vmem:[%s2554_s27 + $0x28] sm:$0xff]  ;;  %1645 = vst [vmem:[%s2550_s4 + $0x18] sm:$0xff] %v1644_v28  ;;  %v1650_v31 = vld [vmem:[%s2554_s27 + $0x30] sm:$0xff] }
 0x236   : >> { %1647 = vst [vmem:[%s2550_s4 + $0x20] sm:$0xff] %v1646_v29  ;;  %1649 = vst [vmem:[%s2550_s4 + $0x28] sm:$0xff] %v1648_v30  ;;  %v1652_v32 = vld [vmem:[%s2554_s27 + $0x38] sm:$0xff]  ;;  %v1654_v33 = vld [vmem:[%s2554_s27 + $0x40] sm:$0xff]  ;;  %s3330_s30 = smov (%p1767_p11, %s1766_s30), 0 }
 0x237   : >> { %1651 = vst [vmem:[%s2550_s4 + $0x30] sm:$0xff] %v1650_v31  ;;  %1653 = vst [vmem:[%s2550_s4 + $0x38] sm:$0xff] %v1652_v32  ;;  %v1656_v34 = vld [vmem:[%s2554_s27 + $0x48] sm:$0xff]  ;;  %v1658_v35 = vld [vmem:[%s2554_s27 + $0x50] sm:$0xff]  ;;  %s1979_s6 = sshll.u32 %s3330_s30, 9  ;;  %s3323_s7 = smov %s3330_s30 }
 0x238   : >> { %1655 = vst [vmem:[%s2550_s4 + $0x40] sm:$0xff] %v1654_v33  ;;  %v1660_v36 = vld [vmem:[%s2554_s27 + $0x58] sm:$0xff]  ;;  %1657 = vst [vmem:[%s2550_s4 + $0x48] sm:$0xff] %v1656_v34  ;;  %v1662_v37 = vld [vmem:[%s2554_s27 + $0x60] sm:$0xff]  ;;  %s3186_s8 = scalar_lea.vmem %s2913_s16, %s1979_s6 [#allocation3]   ;;  %s3189_s9 = scalar_lea.vmem %s3113_s24, %s1979_s6  }
 0x239   : >> { %1659 = vst [vmem:[%s2550_s4 + $0x50] sm:$0xff] %v1658_v35  ;;  %1661 = vst [vmem:[%s2550_s4 + $0x58] sm:$0xff] %v1660_v36  ;;  %v1664_v38 = vld [vmem:[%s2554_s27 + $0x68] sm:$0xff]  ;;  %v1666_v39 = vld [vmem:[%s2554_s27 + $0x70] sm:$0xff] }
 0x23a   : >> { %1663 = vst [vmem:[%s2550_s4 + $0x60] sm:$0xff] %v1662_v37  ;;  %1665 = vst [vmem:[%s2550_s4 + $0x68] sm:$0xff] %v1664_v38  ;;  %v1668_v40 = vld [vmem:[%s2554_s27 + $0x78] sm:$0xff]  ;;  %v1670_v41 = vld [vmem:[%s2554_s27 + $0x80] sm:$0xff] }
 0x23b   : >> { %1667 = vst [vmem:[%s2550_s4 + $0x70] sm:$0xff] %v1666_v39  ;;  %v1672_v42 = vld [vmem:[%s2554_s27 + $0x88] sm:$0xff]  ;;  %1669 = vst [vmem:[%s2550_s4 + $0x78] sm:$0xff] %v1668_v40  ;;  %v1674_v43 = vld [vmem:[%s2554_s27 + $0x90] sm:$0xff] }
 0x23c   : >> { %1671 = vst [vmem:[%s2550_s4 + $0x80] sm:$0xff] %v1670_v41  ;;  %1673 = vst [vmem:[%s2550_s4 + $0x88] sm:$0xff] %v1672_v42  ;;  %v1676_v44 = vld [vmem:[%s2554_s27 + $0x98] sm:$0xff]  ;;  %v1678_v45 = vld [vmem:[%s2554_s27 + $0xa0] sm:$0xff] }
 0x23d   : >> { %1675 = vst [vmem:[%s2550_s4 + $0x90] sm:$0xff] %v1674_v43  ;;  %1677 = vst [vmem:[%s2550_s4 + $0x98] sm:$0xff] %v1676_v44  ;;  %v1680_v46 = vld [vmem:[%s2554_s27 + $0xa8] sm:$0xff]  ;;  %v1682_v47 = vld [vmem:[%s2554_s27 + $0xb0] sm:$0xff] }
 0x23e   : >> { %1679 = vst [vmem:[%s2550_s4 + $0xa0] sm:$0xff] %v1678_v45  ;;  %v1684_v48 = vld [vmem:[%s2554_s27 + $0xb8] sm:$0xff]  ;;  %1681 = vst [vmem:[%s2550_s4 + $0xa8] sm:$0xff] %v1680_v46  ;;  %v1686_v49 = vld [vmem:[%s2554_s27 + $0xc0] sm:$0xff] }
 0x23f   : >> { %1683 = vst [vmem:[%s2550_s4 + $0xb0] sm:$0xff] %v1682_v47  ;;  %1685 = vst [vmem:[%s2550_s4 + $0xb8] sm:$0xff] %v1684_v48  ;;  %v1688_v50 = vld [vmem:[%s2554_s27 + $0xc8] sm:$0xff]  ;;  %v1690_v51 = vld [vmem:[%s2554_s27 + $0xd0] sm:$0xff] }
 0x240   : >> { %1687 = vst [vmem:[%s2550_s4 + $0xc0] sm:$0xff] %v1686_v49  ;;  %1689 = vst [vmem:[%s2550_s4 + $0xc8] sm:$0xff] %v1688_v50  ;;  %v1692_v52 = vld [vmem:[%s2554_s27 + $0xd8] sm:$0xff]  ;;  %v1694_v53 = vld [vmem:[%s2554_s27 + $0xe0] sm:$0xff] }
 0x241   : >> { %1691 = vst [vmem:[%s2550_s4 + $0xd0] sm:$0xff] %v1690_v51  ;;  %v1696_v54 = vld [vmem:[%s2554_s27 + $0xe8] sm:$0xff]  ;;  %1693 = vst [vmem:[%s2550_s4 + $0xd8] sm:$0xff] %v1692_v52  ;;  %v1698_v55 = vld [vmem:[%s2554_s27 + $0xf0] sm:$0xff] }
 0x242   : >> { %1695 = vst [vmem:[%s2550_s4 + $0xe0] sm:$0xff] %v1694_v53  ;;  %1697 = vst [vmem:[%s2550_s4 + $0xe8] sm:$0xff] %v1696_v54  ;;  %v1700_v56 = vld [vmem:[%s2554_s27 + $0xf8] sm:$0xff]  ;;  %v1702_v57 = vld [vmem:[%s2554_s27 + $0x100] sm:$0xff] }
 0x243   : >> { %1699 = vst [vmem:[%s2550_s4 + $0xf0] sm:$0xff] %v1698_v55  ;;  %1701 = vst [vmem:[%s2550_s4 + $0xf8] sm:$0xff] %v1700_v56  ;;  %v1704_v58 = vld [vmem:[%s2554_s27 + $0x108] sm:$0xff]  ;;  %v1706_v59 = vld [vmem:[%s2554_s27 + $0x110] sm:$0xff] }
 0x244   : >> { %1703 = vst [vmem:[%s2550_s4 + $0x100] sm:$0xff] %v1702_v57  ;;  %v1708_v60 = vld [vmem:[%s2554_s27 + $0x118] sm:$0xff]  ;;  %1705 = vst [vmem:[%s2550_s4 + $0x108] sm:$0xff] %v1704_v58  ;;  %v1710_v61 = vld [vmem:[%s2554_s27 + $0x120] sm:$0xff] }
 0x245   : >> { %1707 = vst [vmem:[%s2550_s4 + $0x110] sm:$0xff] %v1706_v59  ;;  %1709 = vst [vmem:[%s2550_s4 + $0x118] sm:$0xff] %v1708_v60  ;;  %v1712_v62 = vld [vmem:[%s2554_s27 + $0x128] sm:$0xff]  ;;  %v1714_v63 = vld [vmem:[%s2554_s27 + $0x130] sm:$0xff] }
 0x246   : >> { %1711 = vst [vmem:[%s2550_s4 + $0x120] sm:$0xff] %v1710_v61  ;;  %1713 = vst [vmem:[%s2550_s4 + $0x128] sm:$0xff] %v1712_v62  ;;  %v1716_v0 = vld [vmem:[%s2554_s27 + $0x138] sm:$0xff]  ;;  %v1718_v1 = vld [vmem:[%s2554_s27 + $0x140] sm:$0xff] }
 0x247   : >> { %1715 = vst [vmem:[%s2550_s4 + $0x130] sm:$0xff] %v1714_v63  ;;  %v1720_v2 = vld [vmem:[%s2554_s27 + $0x148] sm:$0xff]  ;;  %1717 = vst [vmem:[%s2550_s4 + $0x138] sm:$0xff] %v1716_v0  ;;  %v1722_v3 = vld [vmem:[%s2554_s27 + $0x150] sm:$0xff] }
 0x248   : >> { %1719 = vst [vmem:[%s2550_s4 + $0x140] sm:$0xff] %v1718_v1  ;;  %1721 = vst [vmem:[%s2550_s4 + $0x148] sm:$0xff] %v1720_v2  ;;  %v1724_v4 = vld [vmem:[%s2554_s27 + $0x158] sm:$0xff]  ;;  %v1726_v5 = vld [vmem:[%s2554_s27 + $0x160] sm:$0xff] }
 0x249   : >> { %1723 = vst [vmem:[%s2550_s4 + $0x150] sm:$0xff] %v1722_v3  ;;  %1725 = vst [vmem:[%s2550_s4 + $0x158] sm:$0xff] %v1724_v4  ;;  %v1728_v6 = vld [vmem:[%s2554_s27 + $0x168] sm:$0xff]  ;;  %v1730_v7 = vld [vmem:[%s2554_s27 + $0x170] sm:$0xff] }
 0x24a   : >> { %1727 = vst [vmem:[%s2550_s4 + $0x160] sm:$0xff] %v1726_v5  ;;  %v1732_v8 = vld [vmem:[%s2554_s27 + $0x178] sm:$0xff]  ;;  %1729 = vst [vmem:[%s2550_s4 + $0x168] sm:$0xff] %v1728_v6  ;;  %v1734_v9 = vld [vmem:[%s2554_s27 + $0x180] sm:$0xff] }
 0x24b   : >> { %1731 = vst [vmem:[%s2550_s4 + $0x170] sm:$0xff] %v1730_v7  ;;  %1733 = vst [vmem:[%s2550_s4 + $0x178] sm:$0xff] %v1732_v8  ;;  %v1736_v10 = vld [vmem:[%s2554_s27 + $0x188] sm:$0xff]  ;;  %v1738_v11 = vld [vmem:[%s2554_s27 + $0x190] sm:$0xff] }
 0x24c   : >> { %1735 = vst [vmem:[%s2550_s4 + $0x180] sm:$0xff] %v1734_v9  ;;  %1737 = vst [vmem:[%s2550_s4 + $0x188] sm:$0xff] %v1736_v10  ;;  %v1740_v12 = vld [vmem:[%s2554_s27 + $0x198] sm:$0xff]  ;;  %v1742_v13 = vld [vmem:[%s2554_s27 + $0x1a0] sm:$0xff] }
 0x24d   : >> { %1739 = vst [vmem:[%s2550_s4 + $0x190] sm:$0xff] %v1738_v11  ;;  %v1744_v14 = vld [vmem:[%s2554_s27 + $0x1a8] sm:$0xff]  ;;  %1741 = vst [vmem:[%s2550_s4 + $0x198] sm:$0xff] %v1740_v12  ;;  %v1746_v15 = vld [vmem:[%s2554_s27 + $0x1b0] sm:$0xff] }
 0x24e   : >> { %1743 = vst [vmem:[%s2550_s4 + $0x1a0] sm:$0xff] %v1742_v13  ;;  %1745 = vst [vmem:[%s2550_s4 + $0x1a8] sm:$0xff] %v1744_v14  ;;  %v1748_v16 = vld [vmem:[%s2554_s27 + $0x1b8] sm:$0xff]  ;;  %v1750_v17 = vld [vmem:[%s2554_s27 + $0x1c0] sm:$0xff] }
 0x24f   : >> { %1747 = vst [vmem:[%s2550_s4 + $0x1b0] sm:$0xff] %v1746_v15  ;;  %1749 = vst [vmem:[%s2550_s4 + $0x1b8] sm:$0xff] %v1748_v16  ;;  %v1752_v18 = vld [vmem:[%s2554_s27 + $0x1c8] sm:$0xff]  ;;  %v1754_v19 = vld [vmem:[%s2554_s27 + $0x1d0] sm:$0xff]  ;;  %1634 = sbr.rel (!%p1631_p12) target bundleno = 563 (0x233), region = 130 }
 0x250   : >> { %1751 = vst [vmem:[%s2550_s4 + $0x1c0] sm:$0xff] %v1750_v17  ;;  %v1756_v21 = vld [vmem:[%s2554_s27 + $0x1d8] sm:$0xff]  ;;  %1753 = vst [vmem:[%s2550_s4 + $0x1c8] sm:$0xff] %v1752_v18  ;;  %v1758_v22 = vld [vmem:[%s2554_s27 + $0x1e0] sm:$0xff] }
 0x251   : >> { %1755 = vst [vmem:[%s2550_s4 + $0x1d0] sm:$0xff] %v1754_v19  ;;  %1757 = vst [vmem:[%s2550_s4 + $0x1d8] sm:$0xff] %v1756_v21  ;;  %v1760_v23 = vld [vmem:[%s2554_s27 + $0x1e8] sm:$0xff]  ;;  %v1762_v25 = vld [vmem:[%s2554_s27 + $0x1f0] sm:$0xff] }
 0x252   : >> { %1759 = vst [vmem:[%s2550_s4 + $0x1e0] sm:$0xff] %v1758_v22  ;;  %1761 = vst [vmem:[%s2550_s4 + $0x1e8] sm:$0xff] %v1760_v23  ;;  %v1764_v26 = vld [vmem:[%s2554_s27 + $0x1f8] sm:$0xff]  ;;  %s3322_s27 = smov %s3186_s8 }
 0x253   : >> { %1763 = vst [vmem:[%s2550_s4 + $0x1f0] sm:$0xff] %v1762_v25  ;;  %1765 = vst [vmem:[%s2550_s4 + $0x1f8] sm:$0xff] %v1764_v26  ;;  %s3321_s4 = smov %s3189_s9 }
 0x254 PF: > { %s3294_s10 = sand.u32 63, %s3328_s20   ;;  %s1990_s11 = sshll.u32 %s3119_s28, 9 }
 0x255   : > { %s1777_s12 = scalar_lea.vmem %s2913_s16, %s1990_s11 [#allocation3]   ;;  %s1779_s13 = scalar_lea.vmem %s3113_s24, %s1990_s11  }
 0x256   : > { %p1984_p13 = scmp.le.s32.totalorder %s3294_s10, 0 }
 0x257   : > { %s2564_s18 = smov (!%p1984_p13), %s1779_s13   ;;  %s2568_s14 = smov (!%p1984_p13), %s1777_s12  }
 0x258   : > { %1870 = sbr.rel (%p1984_p13) target bundleno = 613 (0x265), region = 135  ;;  %s2572_s15 = smov (!%p1984_p13), 0  }
 0x259   : > { %s2576_s17 = smov (!%p1984_p13), 0  }
 0x25d LB: >> { %v1789_v24 = vld [vmem:[%s2570_s14] sm:$0xff]  ;;  %s1791_s20 = sadd.s32 1, %s2574_s15  ;;  %s1783_s17 = sadd.s32 1, %s2578_s17   ;;  %s2578_s17 = sphi %s2576_s17, %s1783_s17   ;;  %s2574_s15 = sphi %s2572_s15, %s2573_s15   ;;  %s2570_s14 = sphi %s2568_s14, %s1796_s14   ;;  %s2566_s18 = sphi %s2564_s18, %s1797_s18  }
 0x25e   : >> { %1790 = vst [vmem:[%s2566_s18] sm:$0xff] %v1789_v24  ;;  %p1792_p0 = scmp.ge.s32.totalorder %s1791_s20, %s3294_s10  ;;  %p1782_p1 = scmp.ge.s32.totalorder %s1783_s17, %s3294_s10 }
 0x260   : >> { %s3332_s20 = smov (%p1792_p0, %s1791_s20), 0  ;;  %1785 = sbr.rel (!%p1782_p1) target bundleno = 605 (0x25d), region = 141 }
 0x261   : >> { %s1985_s16 = sshll.u32 %s3332_s20, 3  ;;  %s2573_s15 = smov %s3332_s20  }
 0x262   : >> { %s1796_s14 = scalar_lea.vmem %s1777_s12, %s1985_s16 [#allocation3]   ;;  %s1797_s18 = scalar_lea.vmem %s1779_s13, %s1985_s16  }
 0x265 PF: > { %p13_p2 = scmp.ge.s32.totalorder %s2628_s23, 4   ;;  %s3324_s20 = smov %s2542_s21 }
 0x266   : > { %s3325_s21 = smov %s2636_s26  ;;  %s3326_s22 = smov %s2628_s23 }
 0x267   :  { %15 = sbr.rel (!%p13_p2) target bundleno = 4 (0x4), region = 152 }

</bundles_post_ra>
